<compile_context>
chip_gen: v7x
topology: tpu7x:2x2x1
jax: 0.10.0
libtpu: 0.0.40
codegen_flags: <defaults>
</compile_context>

<pallas_src>
import functools

import numpy as np
import jax
import jax.numpy as jnp
from jax.experimental import pallas as pl
from jax.experimental.pallas import tpu as pltpu

EPS = 1e-5  # nn.LayerNorm default eps
_INV_SQRT2 = 0.7071067811865476


def _erf(x):
    # Abramowitz & Stegun 7.1.26 rational approximation, |err| <= 1.5e-7.
    a1, a2, a3, a4, a5 = 0.254829592, -0.284496736, 1.421413741, -1.453152027, 1.061405429
    p = 0.3275911
    sgn = jnp.where(x >= 0.0, 1.0, -1.0)
    ax = jnp.abs(x)
    t = 1.0 / (1.0 + p * ax)
    poly = ((((a5 * t + a4) * t + a3) * t + a2) * t + a1) * t
    return sgn * (1.0 - poly * jnp.exp(-ax * ax))


def _gelu(x):
    # exact (erf-based) GELU, matching torch.nn.functional.gelu default.
    return 0.5 * x * (1.0 + _erf(x * _INV_SQRT2))


def _residual_cnn_kernel(rm_ref, bm_ref, mask_ref, w_ref, bias_ref, g_ref, bt_ref,
                         x_ref, o_ref, ypf_ref,
                         *, R, H, W, KH, KW, PAD, PADL):
    # rm_ref   : VMEM (HW, H)          per-W-row averaging matrix (1/W entries)
    # bm_ref   : VMEM (H, HW)          broadcast-back matrix (0/1)
    # mask_ref : VMEM (KW, HW)         per-kx column-validity masks (0/1)
    # w_ref    : VMEM (R, KH*KW*R)     im2col conv weight, block-diagonal over NB
    # bias_ref : VMEM (R, 1)           conv bias per (b, o) row
    # g_ref    : VMEM (1, HW)          LayerNorm gamma tiled over H
    # bt_ref   : VMEM (1, HW)          LayerNorm beta  tiled over H
    # x_ref    : VMEM (R, HW)          NB folded batch elements, lane-dense, R = NB*C
    # o_ref    : VMEM (R, HW)
    # ypf_ref  : VMEM (R, PADL+HW+PADL) flat-padded staging buffer for shifted tap loads
    HW = H * W
    x = x_ref[...].astype(jnp.float32)                  # (R, HW)
    rm = rm_ref[...]                                    # (HW, H)
    bm = bm_ref[...]                                    # (H, HW)
    # Hoist loop-invariant broadcasts (JAX does not CSE broadcast_in_dim).
    gamma = jnp.broadcast_to(g_ref[...], (R, HW))
    beta = jnp.broadcast_to(bt_ref[...], (R, HW))
    wmat = w_ref[...]                                   # (R, KH*KW*R)
    bias = jnp.broadcast_to(bias_ref[...], (R, HW))

    # Column-validity masks: hoisted once, reused by both convs (3 taps each).
    col_mask = {}
    for kx in range(KW):
        if kx != PAD:
            col_mask[kx] = jnp.broadcast_to(mask_ref[kx:kx + 1, :], (R, HW))

    # Zero the halo columns once per step: out-of-image ROW taps then read zeros
    # for free (no select needed).  Interior is overwritten by each conv's staging
    # write, halos stay zero.  Lane-aligned (PADL is a multiple of 128).
    ypf_ref[:, 0:PADL] = jnp.zeros((R, PADL), jnp.float32)
    ypf_ref[:, PADL + HW:PADL + HW + PADL] = jnp.zeros((R, PADL), jnp.float32)

    def ln_gelu(y):
        # LayerNorm over W via factorized reduce + broadcast-back MXU matmuls:
        # no (HW, HW) matrix and no lane->sublane relayout of the flat layout.
        mu = jnp.dot(jnp.dot(y, rm, preferred_element_type=jnp.float32), bm,
                     preferred_element_type=jnp.float32)
        yc = y - mu
        var = jnp.dot(jnp.dot(yc * yc, rm, preferred_element_type=jnp.float32), bm,
                      preferred_element_type=jnp.float32)
        z = yc * jax.lax.rsqrt(var + EPS) * gamma + beta
        return _gelu(z)                                 # dropout == identity (inference)

    def conv(y):
        # im2col from lane-aligned shifted loads of the flat-padded scratch, then
        # ONE MXU matmul covering all folded batch elements (block-diag weight).
        ypf_ref[:, PADL:PADL + HW] = y
        taps = []
        for ky in range(KH):
            for kx in range(KW):
                d = (ky - PAD) * W + (kx - PAD)         # flat spatial offset of this tap
                t = ypf_ref[:, PADL + d:PADL + d + HW]  # (R, HW); row-OOB reads hit zeroed halo
                if kx != PAD:                           # only column-wrapping taps need a mask
                    t = t * col_mask[kx]
                taps.append(t)
        patches = jnp.concatenate(taps, axis=0)         # (KH*KW*R, HW) im2col matrix
        return jnp.dot(wmat, patches, preferred_element_type=jnp.float32) + bias

    h = conv(ln_gelu(x))
    h = conv(ln_gelu(h))
    o_ref[...] = (h + x).astype(o_ref.dtype)


def residual_cnn(x, gamma, beta, conv_w, conv_b, *, batch_block=None):
    N, C, H, W = x.shape
    O, Ci, KH, KW = conv_w.shape
    assert Ci == C and O == C, "residual add requires in_channels == out_channels"
    assert KH % 2 == 1 and KW % 2 == 1
    pad = KH // 2                                # stride=1, padding=kernel//2
    HW = H * W

    # Batch folding: NB elements per grid step.  Default folds the whole batch
    # (best on single-TC v5e/v6e); on v7x pass batch_block=N//2 so the parallel
    # grid has >=2 steps and both TensorCores get work.
    if batch_block is None:
        batch_block = N
    NB = batch_block
    assert N % NB == 0
    R = NB * C
    assert NB == N or R % 8 == 0, "non-full batch blocks must be sublane (8) aligned"

    # Lane-aligned halo width; must cover the most negative tap offset (pad*W + pad).
    PADL = ((W * pad + pad + 127) // 128) * 128

    gamma = jnp.asarray(gamma, jnp.float32).reshape(-1)
    beta = jnp.asarray(beta, jnp.float32).reshape(-1)
    assert gamma.shape == (W,) and beta.shape == (W,), "LayerNorm params must have size W"

    # ---- host-side constants -------------------------------------------------
    hh = np.arange(HW) // W
    ww = np.arange(HW) % W
    # Factorized group-averaging: reduce (HW, H) with 1/W, broadcast-back (H, HW).
    rmat = (hh[:, None] == np.arange(H)[None, :]).astype(np.float32) / float(W)
    bmat = (np.arange(H)[:, None] == hh[None, :]).astype(np.float32)
    # Column-validity mask per kx (row out-of-range handled by the zeroed halo).
    col_masks = np.zeros((KW, HW), np.float32)
    for kx in range(KW):
        col_masks[kx] = ((ww + kx - pad >= 0) & (ww + kx - pad < W)).astype(np.float32)

    # im2col weight, block-diagonal over the folded batch.
    # patches rows are ordered (k=(ky,kx), b, c); output rows are (b, o).
    w_k = np.asarray(conv_w, np.float32).transpose(2, 3, 0, 1).reshape(KH * KW, O, C)
    wbd = np.zeros((NB, O, KH * KW, NB, C), np.float32)
    for b in range(NB):
        wbd[b, :, :, b, :] = np.transpose(w_k, (1, 0, 2))     # (O, K, C)
    wbd = wbd.reshape(NB * O, KH * KW * NB * C)
    bias = np.tile(np.asarray(conv_b, np.float32).reshape(-1), NB).reshape(NB * O, 1)

    g_full = jnp.tile(gamma, H).reshape(1, HW)
    b_full = jnp.tile(beta, H).reshape(1, HW)
    # Lane-dense, sublane-packed layout: (N*C, HW) so one block is (NB*C, HW).
    x2d = x.reshape(N * C, HW)

    kernel = functools.partial(
        _residual_cnn_kernel, R=R, H=H, W=W, KH=KH, KW=KW, PAD=pad, PADL=PADL)

    # Derived VMEM budget (constants + double-buffered blocks + scratch), with
    # generous headroom for in-kernel temporaries; capped below v7x's 64 MiB.
    def _nbytes(shape):
        return int(np.prod(shape)) * 4
    resident = (2 * (_nbytes((HW, H)) + _nbytes((H, HW)) + _nbytes((KW, HW)) +
                     _nbytes(wbd.shape) + _nbytes(bias.shape) + 2 * _nbytes((1, HW)))
                + 4 * _nbytes((R, HW))                       # x/out double buffers
                + _nbytes((R, PADL + HW + PADL)))            # staging scratch
    vmem_limit = int(min(64 * 2**20, max(16 * 2**20, 8 * resident)))

    out = pl.pallas_call(
        kernel,
        out_shape=jax.ShapeDtypeStruct((N * C, HW), x.dtype),
        grid_spec=pltpu.PrefetchScalarGridSpec(
            num_scalar_prefetch=0,
            grid=(N // NB,),
            in_specs=[
                pl.BlockSpec((HW, H), lambda b: (0, 0)),           # LN reduce matrix
                pl.BlockSpec((H, HW), lambda b: (0, 0)),           # LN broadcast-back
                pl.BlockSpec((KW, HW), lambda b: (0, 0)),          # column masks
                pl.BlockSpec(wbd.shape, lambda b: (0, 0)),         # conv weight (block-diag im2col)
                pl.BlockSpec(bias.shape, lambda b: (0, 0)),        # conv bias
                pl.BlockSpec((1, HW), lambda b: (0, 0)),           # gamma (tiled over H)
                pl.BlockSpec((1, HW), lambda b: (0, 0)),           # beta  (tiled over H)
                pl.BlockSpec((R, HW), lambda b: (b, 0)),           # x, NB batch elems folded
            ],
            out_specs=pl.BlockSpec((R, HW), lambda b: (b, 0)),
            scratch_shapes=[
                pltpu.VMEM((R, PADL + HW + PADL), jnp.float32),    # flat-padded staging
            ],
        ),
        compiler_params=pltpu.CompilerParams(
            dimension_semantics=("parallel",),
            vmem_limit_bytes=vmem_limit,
        ),
    )(jnp.asarray(rmat), jnp.asarray(bmat), jnp.asarray(col_masks), jnp.asarray(wbd),
      jnp.asarray(bias), g_full, b_full, x2d)
    return out.reshape(N, C, H, W)


def _reference(x, gamma, beta, conv_w, conv_b):
    # Pure-JAX reference of the PyTorch forward (inference mode).
    g = gamma.reshape(-1)
    bt = beta.reshape(-1)

    def ln_gelu(t):
        mu = jnp.mean(t, axis=-1, keepdims=True)
        var = jnp.mean((t - mu) ** 2, axis=-1, keepdims=True)
        tn = (t - mu) / jnp.sqrt(var + EPS)
        return jax.nn.gelu(tn * g + bt, approximate=False)

    def conv(t):
        y = jax.lax.conv_general_dilated(
            t, conv_w, window_strides=(1, 1), padding=((1, 1), (1, 1)),
            dimension_numbers=("NCHW", "OIHW", "NCHW"),
            precision=jax.lax.Precision.HIGHEST)
        return y + conv_b.reshape(1, -1, 1, 1)

    h = conv(ln_gelu(x))
    h = conv(ln_gelu(h))
    return h + x


if __name__ == "__main__":
    key = jax.random.PRNGKey(0)
    k1, k2, k3, k4, k5 = jax.random.split(key, 5)

    # input_features=16, in_channels=out_channels=4, kernel=3, stride=1, padding=1
    N, C, H, W = 2, 4, 16, 16
    KH = KW = 3

    x = jax.random.normal(k1, (N, C, H, W), jnp.float32)
    gamma = 1.0 + 0.1 * jax.random.normal(k2, (1, W), jnp.float32)
    beta = 0.1 * jax.random.normal(k3, (1, W), jnp.float32)

    fan_in = C * KH * KW
    bound = float(1.0 / (fan_in ** 0.5))
    conv_w = jax.random.uniform(k4, (C, C, KH, KW), jnp.float32, minval=-bound, maxval=bound)
    conv_b = jax.random.uniform(k5, (C,), jnp.float32, minval=-bound, maxval=bound)

    out = jax.block_until_ready(residual_cnn(x, gamma, beta, conv_w, conv_b))

    ref = jax.block_until_ready(_reference(x, gamma, beta, conv_w, conv_b))
    max_err = float(jnp.max(jnp.abs(out - ref)))
    assert out.shape == (N, C, H, W)
    assert jnp.allclose(out, ref, atol=1e-3, rtol=1e-3), f"max abs err = {max_err}"

    print("KERNEL_OK")
</pallas_src>

<mosaic_0001>
module attributes {stable_mosaic.version = 11 : i64} {
  func.func @_residual_cnn_kernel(%arg0: i32, %arg1: memref<256x16xf32, #tpu.memory_space<vmem>>, %arg2: memref<16x256xf32, #tpu.memory_space<vmem>>, %arg3: memref<3x256xf32, #tpu.memory_space<vmem>>, %arg4: memref<8x72xf32, #tpu.memory_space<vmem>>, %arg5: memref<8x1xf32, #tpu.memory_space<vmem>>, %arg6: memref<1x256xf32, #tpu.memory_space<vmem>>, %arg7: memref<1x256xf32, #tpu.memory_space<vmem>>, %arg8: memref<8x256xf32, #tpu.memory_space<vmem>>, %arg9: memref<8x256xf32, #tpu.memory_space<vmem>>, %arg10: memref<8x512xf32, #tpu.memory_space<vmem>>) attributes {dimension_semantics = [#tpu.dimension_semantics<parallel>], iteration_bounds = array<i64: 1>, scalar_prefetch = 0 : i64, scratch_operands = 1 : i64, tpu.core_type = #tpu.core_type<tc>, window_params = [{pipeline_mode = #tpu.pipeline_mode<synchronous>, transform_indices = @transform_0, window_bounds = array<i64: 256, 16>}, {pipeline_mode = #tpu.pipeline_mode<synchronous>, transform_indices = @transform_1, window_bounds = array<i64: 16, 256>}, {pipeline_mode = #tpu.pipeline_mode<synchronous>, transform_indices = @transform_2, window_bounds = array<i64: 3, 256>}, {pipeline_mode = #tpu.pipeline_mode<synchronous>, transform_indices = @transform_3, window_bounds = array<i64: 8, 72>}, {pipeline_mode = #tpu.pipeline_mode<synchronous>, transform_indices = @transform_4, window_bounds = array<i64: 8, 1>}, {pipeline_mode = #tpu.pipeline_mode<synchronous>, transform_indices = @transform_5, window_bounds = array<i64: 1, 256>}, {pipeline_mode = #tpu.pipeline_mode<synchronous>, transform_indices = @transform_6, window_bounds = array<i64: 1, 256>}, {transform_indices = @transform_7, window_bounds = array<i64: 8, 256>}, {transform_indices = @transform_8, window_bounds = array<i64: 8, 256>}]} {
    %c0 = arith.constant 0 : index
    %c0_0 = arith.constant 0 : index
    %0 = vector.load %arg8[%c0, %c0_0] : memref<8x256xf32, #tpu.memory_space<vmem>>, vector<8x256xf32>
    %c0_1 = arith.constant 0 : index
    %c0_2 = arith.constant 0 : index
    %1 = vector.load %arg1[%c0_1, %c0_2] : memref<256x16xf32, #tpu.memory_space<vmem>>, vector<256x16xf32>
    %c0_3 = arith.constant 0 : index
    %c0_4 = arith.constant 0 : index
    %2 = vector.load %arg2[%c0_3, %c0_4] : memref<16x256xf32, #tpu.memory_space<vmem>>, vector<16x256xf32>
    %c0_5 = arith.constant 0 : index
    %c0_6 = arith.constant 0 : index
    %3 = vector.load %arg6[%c0_5, %c0_6] : memref<1x256xf32, #tpu.memory_space<vmem>>, vector<1x256xf32>
    %4 = vector.shape_cast %3 : vector<1x256xf32> to vector<1x256xf32>
    %5 = vector.broadcast %4 : vector<1x256xf32> to vector<8x256xf32>
    %c0_7 = arith.constant 0 : index
    %c0_8 = arith.constant 0 : index
    %6 = vector.load %arg7[%c0_7, %c0_8] : memref<1x256xf32, #tpu.memory_space<vmem>>, vector<1x256xf32>
    %7 = vector.shape_cast %6 : vector<1x256xf32> to vector<1x256xf32>
    %8 = vector.broadcast %7 : vector<1x256xf32> to vector<8x256xf32>
    %c0_9 = arith.constant 0 : index
    %c0_10 = arith.constant 0 : index
    %9 = vector.load %arg4[%c0_9, %c0_10] : memref<8x72xf32, #tpu.memory_space<vmem>>, vector<8x72xf32>
    %c0_11 = arith.constant 0 : index
    %c0_12 = arith.constant 0 : index
    %10 = vector.load %arg5[%c0_11, %c0_12] : memref<8x1xf32, #tpu.memory_space<vmem>>, vector<8x1xf32>
    %11 = vector.shape_cast %10 : vector<8x1xf32> to vector<8x1xf32>
    %12 = vector.broadcast %11 : vector<8x1xf32> to vector<8x256xf32>
    %c0_13 = arith.constant 0 : index
    %c0_14 = arith.constant 0 : index
    %13 = vector.load %arg3[%c0_13, %c0_14] : memref<3x256xf32, #tpu.memory_space<vmem>>, vector<1x256xf32>
    %14 = vector.shape_cast %13 : vector<1x256xf32> to vector<1x256xf32>
    %15 = vector.broadcast %14 : vector<1x256xf32> to vector<8x256xf32>
    %c2 = arith.constant 2 : index
    %c0_15 = arith.constant 0 : index
    %16 = vector.load %arg3[%c2, %c0_15] : memref<3x256xf32, #tpu.memory_space<vmem>>, vector<1x256xf32>
    %17 = vector.shape_cast %16 : vector<1x256xf32> to vector<1x256xf32>
    %18 = vector.broadcast %17 : vector<1x256xf32> to vector<8x256xf32>
    %cst = arith.constant 0.000000e+00 : f32
    %19 = vector.broadcast %cst : f32 to vector<8x128xf32>
    %c0_16 = arith.constant 0 : index
    %c0_17 = arith.constant 0 : index
    %20 = vector.load %arg10[%c0_16, %c0_17] : memref<8x512xf32, #tpu.memory_space<vmem>>, vector<8x128xf32>
    tpu.vector_store %arg10[%c0_16, %c0_17], %19 {strides = array<i32>} : memref<8x512xf32, #tpu.memory_space<vmem>>, vector<8x128xf32>,
    %cst_18 = arith.constant 0.000000e+00 : f32
    %21 = vector.broadcast %cst_18 : f32 to vector<8x128xf32>
    %c0_19 = arith.constant 0 : index
    %c384 = arith.constant 384 : index
    %22 = vector.load %arg10[%c0_19, %c384] : memref<8x512xf32, #tpu.memory_space<vmem>>, vector<8x128xf32>
    tpu.vector_store %arg10[%c0_19, %c384], %21 {strides = array<i32>} : memref<8x512xf32, #tpu.memory_space<vmem>>, vector<8x128xf32>,
    %cst_20 = arith.constant dense<0.000000e+00> : vector<8x16xf32>
    %23 = tpu.matmul %0, %1, %cst_20 {dimension_numbers = #tpu.dot_dimension_numbers<[1], [0], [0], [1], [0, 0, 1, 1], [], []>} : vector<8x256xf32>, vector<256x16xf32>, vector<8x16xf32> -> vector<8x16xf32>
    %cst_21 = arith.constant dense<0.000000e+00> : vector<8x256xf32>
    %24 = tpu.matmul %23, %2, %cst_21 {dimension_numbers = #tpu.dot_dimension_numbers<[1], [0], [0], [1], [0, 0, 1, 1], [], []>} : vector<8x16xf32>, vector<16x256xf32>, vector<8x256xf32> -> vector<8x256xf32>
    %25 = arith.subf %0, %24 : vector<8x256xf32>
    %26 = arith.mulf %25, %25 : vector<8x256xf32>
    %cst_22 = arith.constant dense<0.000000e+00> : vector<8x16xf32>
    %27 = tpu.matmul %26, %1, %cst_22 {dimension_numbers = #tpu.dot_dimension_numbers<[1], [0], [0], [1], [0, 0, 1, 1], [], []>} : vector<8x256xf32>, vector<256x16xf32>, vector<8x16xf32> -> vector<8x16xf32>
    %cst_23 = arith.constant dense<0.000000e+00> : vector<8x256xf32>
    %28 = tpu.matmul %27, %2, %cst_23 {dimension_numbers = #tpu.dot_dimension_numbers<[1], [0], [0], [1], [0, 0, 1, 1], [], []>} : vector<8x16xf32>, vector<16x256xf32>, vector<8x256xf32> -> vector<8x256xf32>
    %cst_24 = arith.constant 9.99999974E-6 : f32
    %29 = vector.broadcast %cst_24 : f32 to vector<8x256xf32>
    %30 = arith.addf %28, %29 : vector<8x256xf32>
    %31 = math.rsqrt %30 : vector<8x256xf32>
    %32 = arith.mulf %25, %31 : vector<8x256xf32>
    %33 = arith.mulf %32, %5 : vector<8x256xf32>
    %34 = arith.addf %33, %8 : vector<8x256xf32>
    %cst_25 = arith.constant 5.000000e-01 : f32
    %35 = vector.broadcast %cst_25 : f32 to vector<8x256xf32>
    %36 = arith.mulf %35, %34 : vector<8x256xf32>
    %cst_26 = arith.constant 0.707106769 : f32
    %37 = vector.broadcast %cst_26 : f32 to vector<8x256xf32>
    %38 = arith.mulf %34, %37 : vector<8x256xf32>
    %cst_27 = arith.constant 0.000000e+00 : f32
    %39 = vector.broadcast %cst_27 : f32 to vector<8x256xf32>
    %40 = arith.cmpf oge, %38, %39 : vector<8x256xf32>
    %cst_28 = arith.constant 1.000000e+00 : f32
    %cst_29 = arith.constant -1.000000e+00 : f32
    %41 = vector.broadcast %cst_28 : f32 to vector<8x256xf32>
    %42 = vector.broadcast %cst_29 : f32 to vector<8x256xf32>
    %43 = arith.select %40, %41, %42 : vector<8x256xi1>, vector<8x256xf32>
    %44 = math.absf %38 : vector<8x256xf32>
    %cst_30 = arith.constant 0.327591091 : f32
    %45 = vector.broadcast %cst_30 : f32 to vector<8x256xf32>
    %46 = arith.mulf %45, %44 : vector<8x256xf32>
    %cst_31 = arith.constant 1.000000e+00 : f32
    %47 = vector.broadcast %cst_31 : f32 to vector<8x256xf32>
    %48 = arith.addf %47, %46 : vector<8x256xf32>
    %cst_32 = arith.constant 1.000000e+00 : f32
    %49 = vector.broadcast %cst_32 : f32 to vector<8x256xf32>
    %50 = arith.divf %49, %48 : vector<8x256xf32>
    %cst_33 = arith.constant 1.06140542 : f32
    %51 = vector.broadcast %cst_33 : f32 to vector<8x256xf32>
    %52 = arith.mulf %51, %50 : vector<8x256xf32>
    %cst_34 = arith.constant -1.45315206 : f32
    %53 = vector.broadcast %cst_34 : f32 to vector<8x256xf32>
    %54 = arith.addf %52, %53 : vector<8x256xf32>
    %55 = arith.mulf %54, %50 : vector<8x256xf32>
    %cst_35 = arith.constant 1.42141378 : f32
    %56 = vector.broadcast %cst_35 : f32 to vector<8x256xf32>
    %57 = arith.addf %55, %56 : vector<8x256xf32>
    %58 = arith.mulf %57, %50 : vector<8x256xf32>
    %cst_36 = arith.constant -0.284496725 : f32
    %59 = vector.broadcast %cst_36 : f32 to vector<8x256xf32>
    %60 = arith.addf %58, %59 : vector<8x256xf32>
    %61 = arith.mulf %60, %50 : vector<8x256xf32>
    %cst_37 = arith.constant 0.254829586 : f32
    %62 = vector.broadcast %cst_37 : f32 to vector<8x256xf32>
    %63 = arith.addf %61, %62 : vector<8x256xf32>
    %64 = arith.mulf %63, %50 : vector<8x256xf32>
    %cst_38 = arith.constant 0.000000e+00 : f32
    %65 = vector.broadcast %cst_38 : f32 to vector<8x256xf32>
    %66 = arith.subf %65, %44 : vector<8x256xf32>
    %67 = arith.mulf %66, %44 : vector<8x256xf32>
    %68 = math.exp %67 : vector<8x256xf32>
    %69 = arith.mulf %64, %68 : vector<8x256xf32>
    %cst_39 = arith.constant 1.000000e+00 : f32
    %70 = vector.broadcast %cst_39 : f32 to vector<8x256xf32>
    %71 = arith.subf %70, %69 : vector<8x256xf32>
    %72 = arith.mulf %43, %71 : vector<8x256xf32>
    %cst_40 = arith.constant 1.000000e+00 : f32
    %73 = vector.broadcast %cst_40 : f32 to vector<8x256xf32>
    %74 = arith.addf %73, %72 : vector<8x256xf32>
    %75 = arith.mulf %36, %74 : vector<8x256xf32>
    %c0_41 = arith.constant 0 : index
    %c128 = arith.constant 128 : index
    %76 = vector.load %arg10[%c0_41, %c128] : memref<8x512xf32, #tpu.memory_space<vmem>>, vector<8x256xf32>
    tpu.vector_store %arg10[%c0_41, %c128], %75 {strides = array<i32>} : memref<8x512xf32, #tpu.memory_space<vmem>>, vector<8x256xf32>,
    %c0_42 = arith.constant 0 : index
    %c111 = arith.constant 111 : index
    %77 = vector.load %arg10[%c0_42, %c111] : memref<8x512xf32, #tpu.memory_space<vmem>>, vector<8x256xf32>
    %78 = arith.mulf %77, %15 : vector<8x256xf32>
    %c0_43 = arith.constant 0 : index
    %c112 = arith.constant 112 : index
    %79 = vector.load %arg10[%c0_43, %c112] : memref<8x512xf32, #tpu.memory_space<vmem>>, vector<8x256xf32>
    %c0_44 = arith.constant 0 : index
    %c113 = arith.constant 113 : index
    %80 = vector.load %arg10[%c0_44, %c113] : memref<8x512xf32, #tpu.memory_space<vmem>>, vector<8x256xf32>
    %81 = arith.mulf %80, %18 : vector<8x256xf32>
    %c0_45 = arith.constant 0 : index
    %c127 = arith.constant 127 : index
    %82 = vector.load %arg10[%c0_45, %c127] : memref<8x512xf32, #tpu.memory_space<vmem>>, vector<8x256xf32>
    %83 = arith.mulf %82, %15 : vector<8x256xf32>
    %c0_46 = arith.constant 0 : index
    %c128_47 = arith.constant 128 : index
    %84 = vector.load %arg10[%c0_46, %c128_47] : memref<8x512xf32, #tpu.memory_space<vmem>>, vector<8x256xf32>
    %c0_48 = arith.constant 0 : index
    %c129 = arith.constant 129 : index
    %85 = vector.load %arg10[%c0_48, %c129] : memref<8x512xf32, #tpu.memory_space<vmem>>, vector<8x256xf32>
    %86 = arith.mulf %85, %18 : vector<8x256xf32>
    %c0_49 = arith.constant 0 : index
    %c143 = arith.constant 143 : index
    %87 = vector.load %arg10[%c0_49, %c143] : memref<8x512xf32, #tpu.memory_space<vmem>>, vector<8x256xf32>
    %88 = arith.mulf %87, %15 : vector<8x256xf32>
    %c0_50 = arith.constant 0 : index
    %c144 = arith.constant 144 : index
    %89 = vector.load %arg10[%c0_50, %c144] : memref<8x512xf32, #tpu.memory_space<vmem>>, vector<8x256xf32>
    %c0_51 = arith.constant 0 : index
    %c145 = arith.constant 145 : index
    %90 = vector.load %arg10[%c0_51, %c145] : memref<8x512xf32, #tpu.memory_space<vmem>>, vector<8x256xf32>
    %91 = arith.mulf %90, %18 : vector<8x256xf32>
    %92 = tpu.concatenate %78, %79, %81, %83, %84, %86, %88, %89, %91 in 0 : vector<8x256xf32>, vector<8x256xf32>, vector<8x256xf32>, vector<8x256xf32>, vector<8x256xf32>, vector<8x256xf32>, vector<8x256xf32>, vector<8x256xf32>, vector<8x256xf32> -> vector<72x256xf32>
    %cst_52 = arith.constant dense<0.000000e+00> : vector<8x256xf32>
    %93 = tpu.matmul %9, %92, %cst_52 {dimension_numbers = #tpu.dot_dimension_numbers<[1], [0], [0], [1], [0, 0, 1, 1], [], []>} : vector<8x72xf32>, vector<72x256xf32>, vector<8x256xf32> -> vector<8x256xf32>
    %94 = arith.addf %93, %12 : vector<8x256xf32>
    %cst_53 = arith.constant dense<0.000000e+00> : vector<8x16xf32>
    %95 = tpu.matmul %94, %1, %cst_53 {dimension_numbers = #tpu.dot_dimension_numbers<[1], [0], [0], [1], [0, 0, 1, 1], [], []>} : vector<8x256xf32>, vector<256x16xf32>, vector<8x16xf32> -> vector<8x16xf32>
    %cst_54 = arith.constant dense<0.000000e+00> : vector<8x256xf32>
    %96 = tpu.matmul %95, %2, %cst_54 {dimension_numbers = #tpu.dot_dimension_numbers<[1], [0], [0], [1], [0, 0, 1, 1], [], []>} : vector<8x16xf32>, vector<16x256xf32>, vector<8x256xf32> -> vector<8x256xf32>
    %97 = arith.subf %94, %96 : vector<8x256xf32>
    %98 = arith.mulf %97, %97 : vector<8x256xf32>
    %cst_55 = arith.constant dense<0.000000e+00> : vector<8x16xf32>
    %99 = tpu.matmul %98, %1, %cst_55 {dimension_numbers = #tpu.dot_dimension_numbers<[1], [0], [0], [1], [0, 0, 1, 1], [], []>} : vector<8x256xf32>, vector<256x16xf32>, vector<8x16xf32> -> vector<8x16xf32>
    %cst_56 = arith.constant dense<0.000000e+00> : vector<8x256xf32>
    %100 = tpu.matmul %99, %2, %cst_56 {dimension_numbers = #tpu.dot_dimension_numbers<[1], [0], [0], [1], [0, 0, 1, 1], [], []>} : vector<8x16xf32>, vector<16x256xf32>, vector<8x256xf32> -> vector<8x256xf32>
    %cst_57 = arith.constant 9.99999974E-6 : f32
    %101 = vector.broadcast %cst_57 : f32 to vector<8x256xf32>
    %102 = arith.addf %100, %101 : vector<8x256xf32>
    %103 = math.rsqrt %102 : vector<8x256xf32>
    %104 = arith.mulf %97, %103 : vector<8x256xf32>
    %105 = arith.mulf %104, %5 : vector<8x256xf32>
    %106 = arith.addf %105, %8 : vector<8x256xf32>
    %cst_58 = arith.constant 5.000000e-01 : f32
    %107 = vector.broadcast %cst_58 : f32 to vector<8x256xf32>
    %108 = arith.mulf %107, %106 : vector<8x256xf32>
    %cst_59 = arith.constant 0.707106769 : f32
    %109 = vector.broadcast %cst_59 : f32 to vector<8x256xf32>
    %110 = arith.mulf %106, %109 : vector<8x256xf32>
    %cst_60 = arith.constant 0.000000e+00 : f32
    %111 = vector.broadcast %cst_60 : f32 to vector<8x256xf32>
    %112 = arith.cmpf oge, %110, %111 : vector<8x256xf32>
    %cst_61 = arith.constant 1.000000e+00 : f32
    %cst_62 = arith.constant -1.000000e+00 : f32
    %113 = vector.broadcast %cst_61 : f32 to vector<8x256xf32>
    %114 = vector.broadcast %cst_62 : f32 to vector<8x256xf32>
    %115 = arith.select %112, %113, %114 : vector<8x256xi1>, vector<8x256xf32>
    %116 = math.absf %110 : vector<8x256xf32>
    %cst_63 = arith.constant 0.327591091 : f32
    %117 = vector.broadcast %cst_63 : f32 to vector<8x256xf32>
    %118 = arith.mulf %117, %116 : vector<8x256xf32>
    %cst_64 = arith.constant 1.000000e+00 : f32
    %119 = vector.broadcast %cst_64 : f32 to vector<8x256xf32>
    %120 = arith.addf %119, %118 : vector<8x256xf32>
    %cst_65 = arith.constant 1.000000e+00 : f32
    %121 = vector.broadcast %cst_65 : f32 to vector<8x256xf32>
    %122 = arith.divf %121, %120 : vector<8x256xf32>
    %cst_66 = arith.constant 1.06140542 : f32
    %123 = vector.broadcast %cst_66 : f32 to vector<8x256xf32>
    %124 = arith.mulf %123, %122 : vector<8x256xf32>
    %cst_67 = arith.constant -1.45315206 : f32
    %125 = vector.broadcast %cst_67 : f32 to vector<8x256xf32>
    %126 = arith.addf %124, %125 : vector<8x256xf32>
    %127 = arith.mulf %126, %122 : vector<8x256xf32>
    %cst_68 = arith.constant 1.42141378 : f32
    %128 = vector.broadcast %cst_68 : f32 to vector<8x256xf32>
    %129 = arith.addf %127, %128 : vector<8x256xf32>
    %130 = arith.mulf %129, %122 : vector<8x256xf32>
    %cst_69 = arith.constant -0.284496725 : f32
    %131 = vector.broadcast %cst_69 : f32 to vector<8x256xf32>
    %132 = arith.addf %130, %131 : vector<8x256xf32>
    %133 = arith.mulf %132, %122 : vector<8x256xf32>
    %cst_70 = arith.constant 0.254829586 : f32
    %134 = vector.broadcast %cst_70 : f32 to vector<8x256xf32>
    %135 = arith.addf %133, %134 : vector<8x256xf32>
    %136 = arith.mulf %135, %122 : vector<8x256xf32>
    %cst_71 = arith.constant 0.000000e+00 : f32
    %137 = vector.broadcast %cst_71 : f32 to vector<8x256xf32>
    %138 = arith.subf %137, %116 : vector<8x256xf32>
    %139 = arith.mulf %138, %116 : vector<8x256xf32>
    %140 = math.exp %139 : vector<8x256xf32>
    %141 = arith.mulf %136, %140 : vector<8x256xf32>
    %cst_72 = arith.constant 1.000000e+00 : f32
    %142 = vector.broadcast %cst_72 : f32 to vector<8x256xf32>
    %143 = arith.subf %142, %141 : vector<8x256xf32>
    %144 = arith.mulf %115, %143 : vector<8x256xf32>
    %cst_73 = arith.constant 1.000000e+00 : f32
    %145 = vector.broadcast %cst_73 : f32 to vector<8x256xf32>
    %146 = arith.addf %145, %144 : vector<8x256xf32>
    %147 = arith.mulf %108, %146 : vector<8x256xf32>
    %c0_74 = arith.constant 0 : index
    %c128_75 = arith.constant 128 : index
    %148 = vector.load %arg10[%c0_74, %c128_75] : memref<8x512xf32, #tpu.memory_space<vmem>>, vector<8x256xf32>
    tpu.vector_store %arg10[%c0_74, %c128_75], %147 {strides = array<i32>} : memref<8x512xf32, #tpu.memory_space<vmem>>, vector<8x256xf32>,
    %c0_76 = arith.constant 0 : index
    %c111_77 = arith.constant 111 : index
    %149 = vector.load %arg10[%c0_76, %c111_77] : memref<8x512xf32, #tpu.memory_space<vmem>>, vector<8x256xf32>
    %150 = arith.mulf %149, %15 : vector<8x256xf32>
    %c0_78 = arith.constant 0 : index
    %c112_79 = arith.constant 112 : index
    %151 = vector.load %arg10[%c0_78, %c112_79] : memref<8x512xf32, #tpu.memory_space<vmem>>, vector<8x256xf32>
    %c0_80 = arith.constant 0 : index
    %c113_81 = arith.constant 113 : index
    %152 = vector.load %arg10[%c0_80, %c113_81] : memref<8x512xf32, #tpu.memory_space<vmem>>, vector<8x256xf32>
    %153 = arith.mulf %152, %18 : vector<8x256xf32>
    %c0_82 = arith.constant 0 : index
    %c127_83 = arith.constant 127 : index
    %154 = vector.load %arg10[%c0_82, %c127_83] : memref<8x512xf32, #tpu.memory_space<vmem>>, vector<8x256xf32>
    %155 = arith.mulf %154, %15 : vector<8x256xf32>
    %c0_84 = arith.constant 0 : index
    %c128_85 = arith.constant 128 : index
    %156 = vector.load %arg10[%c0_84, %c128_85] : memref<8x512xf32, #tpu.memory_space<vmem>>, vector<8x256xf32>
    %c0_86 = arith.constant 0 : index
    %c129_87 = arith.constant 129 : index
    %157 = vector.load %arg10[%c0_86, %c129_87] : memref<8x512xf32, #tpu.memory_space<vmem>>, vector<8x256xf32>
    %158 = arith.mulf %157, %18 : vector<8x256xf32>
    %c0_88 = arith.constant 0 : index
    %c143_89 = arith.constant 143 : index
    %159 = vector.load %arg10[%c0_88, %c143_89] : memref<8x512xf32, #tpu.memory_space<vmem>>, vector<8x256xf32>
    %160 = arith.mulf %159, %15 : vector<8x256xf32>
    %c0_90 = arith.constant 0 : index
    %c144_91 = arith.constant 144 : index
    %161 = vector.load %arg10[%c0_90, %c144_91] : memref<8x512xf32, #tpu.memory_space<vmem>>, vector<8x256xf32>
    %c0_92 = arith.constant 0 : index
    %c145_93 = arith.constant 145 : index
    %162 = vector.load %arg10[%c0_92, %c145_93] : memref<8x512xf32, #tpu.memory_space<vmem>>, vector<8x256xf32>
    %163 = arith.mulf %162, %18 : vector<8x256xf32>
    %164 = tpu.concatenate %150, %151, %153, %155, %156, %158, %160, %161, %163 in 0 : vector<8x256xf32>, vector<8x256xf32>, vector<8x256xf32>, vector<8x256xf32>, vector<8x256xf32>, vector<8x256xf32>, vector<8x256xf32>, vector<8x256xf32>, vector<8x256xf32> -> vector<72x256xf32>
    %cst_94 = arith.constant dense<0.000000e+00> : vector<8x256xf32>
    %165 = tpu.matmul %9, %164, %cst_94 {dimension_numbers = #tpu.dot_dimension_numbers<[1], [0], [0], [1], [0, 0, 1, 1], [], []>} : vector<8x72xf32>, vector<72x256xf32>, vector<8x256xf32> -> vector<8x256xf32>
    %166 = arith.addf %165, %12 : vector<8x256xf32>
    %167 = arith.addf %166, %0 : vector<8x256xf32>
    %c0_95 = arith.constant 0 : index
    %c0_96 = arith.constant 0 : index
    %168 = vector.load %arg9[%c0_95, %c0_96] : memref<8x256xf32, #tpu.memory_space<vmem>>, vector<8x256xf32>
    tpu.vector_store %arg9[%c0_95, %c0_96], %167 {strides = array<i32>} : memref<8x256xf32, #tpu.memory_space<vmem>>, vector<8x256xf32>,
    return
  }
  func.func @transform_0(%arg0: i32) -> (i32, i32) {
    %c0_i32 = arith.constant 0 : i32
    %c0_i32_0 = arith.constant 0 : i32
    %c0_i32_1 = arith.constant 0 : i32
    return %c0_i32, %c0_i32_0 : i32, i32
  }
  func.func @transform_1(%arg0: i32) -> (i32, i32) {
    %c0_i32 = arith.constant 0 : i32
    %c0_i32_0 = arith.constant 0 : i32
    %c0_i32_1 = arith.constant 0 : i32
    return %c0_i32, %c0_i32_0 : i32, i32
  }
  func.func @transform_2(%arg0: i32) -> (i32, i32) {
    %c0_i32 = arith.constant 0 : i32
    %c0_i32_0 = arith.constant 0 : i32
    %c0_i32_1 = arith.constant 0 : i32
    return %c0_i32, %c0_i32_0 : i32, i32
  }
  func.func @transform_3(%arg0: i32) -> (i32, i32) {
    %c0_i32 = arith.constant 0 : i32
    %c0_i32_0 = arith.constant 0 : i32
    %c0_i32_1 = arith.constant 0 : i32
    return %c0_i32, %c0_i32_0 : i32, i32
  }
  func.func @transform_4(%arg0: i32) -> (i32, i32) {
    %c0_i32 = arith.constant 0 : i32
    %c0_i32_0 = arith.constant 0 : i32
    %c0_i32_1 = arith.constant 0 : i32
    return %c0_i32, %c0_i32_0 : i32, i32
  }
  func.func @transform_5(%arg0: i32) -> (i32, i32) {
    %c0_i32 = arith.constant 0 : i32
    %c0_i32_0 = arith.constant 0 : i32
    %c0_i32_1 = arith.constant 0 : i32
    return %c0_i32, %c0_i32_0 : i32, i32
  }
  func.func @transform_6(%arg0: i32) -> (i32, i32) {
    %c0_i32 = arith.constant 0 : i32
    %c0_i32_0 = arith.constant 0 : i32
    %c0_i32_1 = arith.constant 0 : i32
    return %c0_i32, %c0_i32_0 : i32, i32
  }
  func.func @transform_7(%arg0: i32) -> (i32, i32) {
    %c0_i32 = arith.constant 0 : i32
    %c0_i32_0 = arith.constant 0 : i32
    return %arg0, %c0_i32 : i32, i32
  }
  func.func @transform_8(%arg0: i32) -> (i32, i32) {
    %c0_i32 = arith.constant 0 : i32
    %c0_i32_0 = arith.constant 0 : i32
    return %arg0, %c0_i32 : i32, i32
  }
}

</mosaic_0001>

<bundles_post_ra>
// kernel: tpu_custom_call.1
= control target key start
LH: loop header
LB: loop body
LE: loop exit
PB: predicated region body
PF: predicated region fallthrough
CT: control target
= control target key end

     0   :  { %s2652_s0 = inlined_call_operand.vmem [shape: f32[256,16], index: 0, kind: input, shape index: {}]   ;;  %s2653_s1 = inlined_call_operand.vmem [shape: f32[16,256], index: 1, kind: input, shape index: {}]   ;;  %s2654_s2 = inlined_call_operand.vmem [shape: f32[3,256], index: 2, kind: input, shape index: {}]   ;;  %s2655_s3 = inlined_call_operand.vmem [shape: f32[8,72], index: 3, kind: input, shape index: {}]   ;;  %s2656_s4 = inlined_call_operand.vmem [shape: f32[8,1], index: 4, kind: input, shape index: {}]   ;;  %s2657_s5 = inlined_call_operand.vmem [shape: f32[1,256], index: 5, kind: input, shape index: {}]   ;;  %s2658_s6 = inlined_call_operand.vmem [shape: f32[1,256], index: 6, kind: input, shape index: {}]   ;;  %s2659_s7 = inlined_call_operand.vmem [shape: f32[8,256], index: 7, kind: input, shape index: {}]   ;;  %s2660_s8 = inlined_call_operand.hbm [shape: f32[8,256], index: 8, kind: output, shape index: {}]  }
   0x1   :  { %v48_v0 = vld [vmem:[%s2652_s0 + $0x80] sm:$0xff]  ;;  %v49_v1 = vld [vmem:[%s2652_s0 + $0x88] sm:$0xff]  ;;  %v50_v5 = vld [vmem:[%s2652_s0 + $0x90] sm:$0xff] }
   0x2   :  { %v32_v2 = vld [vmem:[%s2652_s0] sm:$0xff]  ;;  %v2108_v3 = vpack.c.bf16 %v49_v1, %v48_v0  ;;  %v33_v4 = vld [vmem:[%s2652_s0 + $0x8] sm:$0xff]  ;;  %v51_v6 = vld [vmem:[%s2652_s0 + $0x98] sm:$0xff] }
   0x3   :  { %v2119_v7 = vpack.c.bf16 %v33_v4, %v32_v2  ;;  %v2121_v8 = vpack.c.bf16 %v51_v6, %v50_v5  ;;  %v34_v9 = vld [vmem:[%s2652_s0 + $0x10] sm:$0xff]  ;;  %v35_v10 = vld [vmem:[%s2652_s0 + $0x18] sm:$0xff]  ;;  %v52_v11 = vld [vmem:[%s2652_s0 + $0xa0] sm:$0xff] }
   0x4   :  { %1605 = vmatprep.subr.bf16.mxu0 %v2108_v3  ;;  %v53_v12 = vld [vmem:[%s2652_s0 + $0xa8] sm:$0xff]  ;;  %v2137_v13 = vpack.c.bf16 %v35_v10, %v34_v9  ;;  %v36_v15 = vld [vmem:[%s2652_s0 + $0x20] sm:$0xff]  ;;  %v54_v17 = vld [vmem:[%s2652_s0 + $0xb0] sm:$0xff] }
   0x5   :  { %1607 = vmatpush3.bf16.msra.mxu0 %v2119_v7  ;;  %v2140_v14 = vpack.c.bf16 %v53_v12, %v52_v11  ;;  %v37_v16 = vld [vmem:[%s2652_s0 + $0x28] sm:$0xff]  ;;  %v55_v18 = vld [vmem:[%s2652_s0 + $0xb8] sm:$0xff]  ;;  %v38_v21 = vld [vmem:[%s2652_s0 + $0x30] sm:$0xff] }
   0x6   :  { %1609 = vmatprep.subr.bf16.mxu0 %v2121_v8  ;;  %v2155_v19 = vpack.c.bf16 %v37_v16, %v36_v15  ;;  %v2158_v20 = vpack.c.bf16 %v55_v18, %v54_v17  ;;  %v39_v22 = vld [vmem:[%s2652_s0 + $0x38] sm:$0xff]  ;;  %v56_v23 = vld [vmem:[%s2652_s0 + $0xc0] sm:$0xff]  ;;  %v57_v24 = vld [vmem:[%s2652_s0 + $0xc8] sm:$0xff] }
   0x7   :  { %v2175_v25 = vld [vmem:[%s2659_s7 + $0x8] sm:$0xff] }
   0x8   :  { %186 = vmatprep.mubr.f32.mxu0 %v2175_v25 }
   0x9   :  { %1611 = vmatpush3.bf16.msra.mxu0 %v2137_v13 }
   0xa   :  { %1613 = vmatprep.subr.bf16.mxu0 %v2140_v14 }
   0xb   :  { %13 = vsyncpa [#allocation4], 0  ;;  %v2179_v26 = vpack.c.bf16 %v39_v22, %v38_v21  ;;  %v2182_v27 = vpack.c.bf16 %v57_v24, %v56_v23  ;;  %v40_v28 = vld [vmem:[%s2652_s0 + $0x40] sm:$0xff]  ;;  %v41_v29 = vld [vmem:[%s2652_s0 + $0x48] sm:$0xff]  ;;  %v2038_v56 = vmov 0.0   ;;  %vm192_vm0 = vcmask 130048  }
   0xc   :  { %v58_v30 = vld [vmem:[%s2652_s0 + $0xd0] sm:$0xff]  ;;  %v59_v31 = vld [vmem:[%s2652_s0 + $0xd8] sm:$0xff]  ;;  %v2197_v32 = vpack.c.bf16 %v41_v29, %v40_v28  ;;  %v60_v36 = vld [vmem:[%s2652_s0 + $0xe0] sm:$0xff]  ;;  %260 = vmatprep.mubr.f32.mxu1 %v2038_v56  ;;  %v70_v2 = vlaneseq  ;;  %s2039_s17 = smov 113   ;;  %s2040_s18 = smov 127   ;;  %vm498_vm3 = vcmask 924672  }
   0xd   :  { %1615 = vmatpush3.bf16.msra.mxu0 %v2155_v19  ;;  %v2200_v33 = vpack.c.bf16 %v59_v31, %v58_v30  ;;  %v42_v34 = vld [vmem:[%s2652_s0 + $0x50] sm:$0xff]  ;;  %v43_v35 = vld [vmem:[%s2652_s0 + $0x58] sm:$0xff]  ;;  %v61_v37 = vld [vmem:[%s2652_s0 + $0xe8] sm:$0xff]  ;;  %s2041_s19 = smov 1   ;;  %s2042_s20 = smov 15   ;;  %vm510_vm4 = vcmask 1039360  }
   0xe   :  { %1617 = vmatprep.subr.bf16.mxu0 %v2158_v20  ;;  %v2215_v38 = vpack.c.bf16 %v43_v35, %v42_v34  ;;  %v2218_v39 = vpack.c.bf16 %v61_v37, %v60_v36  ;;  %v44_v40 = vld [vmem:[%s2652_s0 + $0x60] sm:$0xff]  ;;  %v45_v41 = vld [vmem:[%s2652_s0 + $0x68] sm:$0xff]  ;;  %v62_v42 = vld [vmem:[%s2652_s0 + $0xf0] sm:$0xff]  ;;  %v71_v4 = vshrl.u32 %v70_v2, 7  ;;  %s2044_s21 = smov 111   ;;  %s2045_s22 = smov 112  }
   0xf   :  { %v63_v43 = vld [vmem:[%s2652_s0 + $0xf8] sm:$0xff]  ;;  %v2233_v44 = vpack.c.bf16 %v45_v41, %v44_v40  ;;  %v46_v46 = vld [vmem:[%s2652_s0 + $0x70] sm:$0xff]  ;;  %v30_v49 = vld [vmem:[%s2659_s7] sm:$0xff]  ;;  %s2046_s23 = smov 126   ;;  %s2047_s24 = smov 110   ;;  %vm537_vm5 = vcmask 121856  }
  0x10   :  { %v2236_v45 = vpack.c.bf16 %v63_v43, %v62_v42  ;;  %v47_v47 = vld [vmem:[%s2652_s0 + $0x78] sm:$0xff]  ;;  %v65_v50 = vld [vmem:[%s2653_s1 + $0x8] sm:$0xff]  ;;  %v64_v53 = vld [vmem:[%s2653_s1] sm:$0xff]  ;;  %v72_v9 = vsub.s32 0, %v71_v4  ;;  %v76_v10 = vsub.s32 1, %v71_v4  ;;  %vm525_vm6 = vcmask 7168  }
  0x11   :  { %1619 = vmatpush3.bf16.msra.mxu0 %v2179_v26  ;;  %v2245_v48 = vpack.c.bf16 %v47_v47, %v46_v46  ;;  %v67_v51 = vld [vmem:[%s2653_s1 + $0x18] sm:$0xff]  ;;  %v66_v54 = vld [vmem:[%s2653_s1 + $0x10] sm:$0xff]  ;;  %v1457_v5 = vld [vmem:[%s2654_s2 + $0x2] ss:$4 sm:$0x3]  ;;  %vm486_vm7 = vcmask 908288  }
  0x12   :  { %1621 = vmatprep.subr.bf16.mxu0 %v2182_v27  ;;  %v2258_v52 = vpack.c.bf16 %v67_v51, %v65_v50  ;;  %v2266_v55 = vpack.c.bf16 %v66_v54, %v64_v53  ;;  %v99_v6 = vld [vmem:[%s2654_s2] ss:$4 sm:$0x3]  ;;  %v115_v11 = vrot.slane %v1457_v5, %v72_v9  ;;  %v119_v15 = vrot.slane %v1457_v5, %v76_v10  ;;  %s2043_s2 = smov 17   ;;  %s2051_s29 = smov 94  }
  0x13   :  { %v104_v12 = vrot.slane %v99_v6, %v72_v9  ;;  %v108_v16 = vrot.slane %v99_v6, %v76_v10  ;;  %v68_v37 = vld [vmem:[%s2657_s5] sm:$0x3]  ;;  %s2049_s5 = smov 95   ;;  %vm549_vm8 = vcmask 138240   ;;  %vm589_vm9 = vcmask 916480  }
  0x14   :  { %1637 = vmatprep.subr.bf16.mxu1 %v2258_v52  ;;  %494 = vrot.lane.b32.xlu0 %v115_v11, %s2039_s17  ;;  %v80_v40 = vld [vmem:[%s2658_s6] sm:$0x3]  ;;  %v2362_v41 = vrot.slane %v68_v37, %v72_v9  ;;  %v2364_v43 = vrot.slane %v68_v37, %v76_v10  ;;  %s2050_s6 = smov 96   ;;  %vm577_vm10 = vcmask 1031168   ;;  %vm606_vm11 = vcmask 900096  }
  0x15   :  { %1623 = vmatpush3.bf16.msra.mxu0 %v2197_v32  ;;  %1639 = vmatpush1.bf16.msra.mxu1 %v2266_v55  ;;  %v2366_v47 = vrot.slane %v80_v40, %v72_v9  ;;  %v2369_v50 = vrot.slane %v80_v40, %v76_v10  ;;  %vm630_vm12 = vcmask 777216   ;;  %vm618_vm13 = vcmask 785408  }
  0x16   :  { %1625 = vmatprep.subr.bf16.mxu0 %v2200_v33  ;;  %1641 = vmatprep.subr.bf16.mxu1 %v2108_v3  ;;  %vm642_vm14 = vcmask 769024   ;;  %vm738_vm15 = vcmask 588800  }
  0x17   :  { %506 = vrot.lane.b32.xlu1 %v104_v12, %s2040_s18 }
  0x18   :  { %496 = vrot.lane.b32.xlu0 %v119_v15, %s2039_s17 }
  0x19   :  { %1627 = vmatpush3.bf16.msra.mxu0 %v2215_v38 }
  0x1a   :  { %1629 = vmatprep.subr.bf16.mxu0 %v2218_v39 }
  0x1b   :  { %508 = vrot.lane.b32.xlu1 %v108_v16, %s2040_s18 }
  0x1c   :  { %521 = vrot.lane.b32.xlu0 %v115_v11, %s2041_s19 }
  0x1d   :  { %1631 = vmatpush3.bf16.msra.mxu0 %v2233_v44 }
  0x1e   :  { %1633 = vmatprep.subr.bf16.mxu0 %v2236_v45 }
  0x1f   :  { %523 = vrot.lane.b32.xlu1 %v119_v15, %s2041_s19 }
  0x20   :  { %533 = vrot.lane.b32.xlu0 %v104_v12, %s2042_s20 }
  0x21   :  { %1635 = vmatpush3.bf16.msra.mxu0 %v2245_v48 }
  0x22   :  { %1673 = vmatprep.subr.bf16.mxu0 %v2258_v52 }
  0x23   :  { %535 = vrot.lane.b32.xlu1 %v108_v16, %s2042_s20 }
  0x24   :  { %187 = vmatmul.mubr.f32.vlgmr.msra.gmra.mrb[0].mxu0 %v30_v49  ;;  %545 = vrot.lane.b32.xlu0 %v115_v11, %s2043_s2 }
  0x25   :  { %1675 = vmatpush1.bf16.msra.mxu0 %v2266_v55  ;;  %408 = vmatprep.mubr.f32.mxu0 %v2038_v56 }
  0x27   :  { %547 = vrot.lane.b32.xlu1 %v119_v15, %s2043_s2 }
  0x28   :  { %482 = vrot.lane.b32.xlu0 %v104_v12, %s2044_s21 }
  0x2b   :  { %484 = vrot.lane.b32.xlu1 %v108_v16, %s2044_s21 }
  0x2f   :  { %560 = vrot.lane.b32.xlu1 %v2038_v56, %s2040_s18 }
  0x89   :  { %v2333_v22 = vpop.permute.xlu1 %506 }
  0x8a   :  { %v2336_v23 = vmul.f32 0.0, %v2333_v22 }
  0x8c   :  { %583 = vrot.lane.b32.xlu1 %v2336_v23, %s2045_s22 }
  0x8d   :  { %v2338_v24 = vpop.permute.xlu1 %508 }
  0x91   :  { %v2347_v29 = vpop.permute.xlu1 %523 }
  0x92   :  { %v2350_v30 = vmul.f32 0.0, %v2347_v29 }
  0xf7   :  { %v1496_v57 = vpop.f32.mrb[0].mxu0 }
  0xf8   :  { %v1497_v58 = vpop.f32.mrb[1].mxu0 }
  0xf9   :  { %v1498_v59 = vadd.f32 %v1497_v58, %v1496_v57 }
  0xfb   :  { %1458 = vmatmul.mubr.msk.f32.vlgmr.msra.gmra.mrb[0].mxu1 %vm192_vm0, %v1498_v59 }
  0xfc   :  { %1643 = vmatpush3.bf16.msra.mxu1 %v2119_v7 }
  0xfd   :  { %1645 = vmatprep.subr.bf16.mxu1 %v2121_v8 }
 0x100   :  { %1647 = vmatpush3.bf16.msra.mxu1 %v2137_v13 }
 0x101   :  { %1649 = vmatprep.subr.bf16.mxu1 %v2140_v14 }
 0x104   :  { %1651 = vmatpush3.bf16.msra.mxu1 %v2155_v19 }
 0x105   :  { %1653 = vmatprep.subr.bf16.mxu1 %v2158_v20 }
 0x108   :  { %1655 = vmatpush3.bf16.msra.mxu1 %v2179_v26 }
 0x109   :  { %1657 = vmatprep.subr.bf16.mxu1 %v2182_v27 }
 0x10c   :  { %1659 = vmatpush3.bf16.msra.mxu1 %v2197_v32 }
 0x10d   :  { %1661 = vmatprep.subr.bf16.mxu1 %v2200_v33 }
 0x110   :  { %1663 = vmatpush3.bf16.msra.mxu1 %v2215_v38 }
 0x111   :  { %1665 = vmatprep.subr.bf16.mxu1 %v2218_v39 }
 0x114   :  { %1667 = vmatpush3.bf16.msra.mxu1 %v2233_v44 }
 0x115   :  { %1669 = vmatprep.subr.bf16.mxu1 %v2236_v45 }
 0x118   :  { %1671 = vmatpush3.bf16.msra.mxu1 %v2245_v48 }
 0x119   :  { %1693 = vmatprep.subr.bf16.mxu1 %v2108_v3 }
 0x1ce   :  { %v262_v60 = vpop.f32.mrb[0].mxu1 }
 0x1cf   :  { %v2292_v61 = vsub.f32 %v30_v49, %v262_v60  ;;  %v264_v62 = vpop.f32.mrb[1].mxu1 }
 0x1d0   :  { %v2295_v63 = vsub.f32 %v2175_v25, %v264_v62  ;;  %v2342_v25 = vpop.permute.xlu0 %494 }
 0x1d1   :  { %v269_v1 = vmul.f32 %v2292_v61, %v2292_v61  ;;  %v2345_v28 = vmul.f32 0.0, %v2342_v25 }
 0x1d2   :  { %v270_v0 = vmul.f32 %v2295_v63, %v2295_v63 }
 0x1d3   :  { %571 = vrot.lane.b32.xlu0 %v2345_v28, %s2046_s23 }
 0x1d4   :  { %335 = vmatprep.mubr.f32.mxu1 %v270_v0  ;;  %v2379_v15 = vpop.permute.xlu0 %496 }
 0x1d5   :  { %336 = vmatmul.mubr.f32.vlgmr.msra.gmra.mrb[2].mxu1 %v269_v1 }
 0x1d6   :  { %1695 = vmatpush3.bf16.msra.mxu1 %v2119_v7 }
 0x1d7   :  { %1697 = vmatprep.subr.bf16.mxu1 %v2121_v8  ;;  %604 = vrot.lane.b32.xlu0 %v2350_v30, %s2047_s24 }
 0x1d8   :  { %v2381_v37 = vpop.permute.xlu0 %521 }
 0x1da   :  { %1699 = vmatpush3.bf16.msra.mxu1 %v2137_v13 }
 0x1db   :  { %1701 = vmatprep.subr.bf16.mxu1 %v2140_v14 }
 0x1de   :  { %1703 = vmatpush3.bf16.msra.mxu1 %v2155_v19 }
 0x1df   :  { %1705 = vmatprep.subr.bf16.mxu1 %v2158_v20 }
 0x1e2   :  { %1707 = vmatpush3.bf16.msra.mxu1 %v2179_v26 }
 0x1e3   :  { %1709 = vmatprep.subr.bf16.mxu1 %v2182_v27 }
 0x1e6   :  { %1711 = vmatpush3.bf16.msra.mxu1 %v2197_v32 }
 0x1e7   :  { %1713 = vmatprep.subr.bf16.mxu1 %v2200_v33 }
 0x1ea   :  { %1715 = vmatpush3.bf16.msra.mxu1 %v2215_v38 }
 0x1eb   :  { %1717 = vmatprep.subr.bf16.mxu1 %v2218_v39 }
 0x1ee   :  { %1719 = vmatpush3.bf16.msra.mxu1 %v2233_v44 }
 0x1ef   :  { %1721 = vmatprep.subr.bf16.mxu1 %v2236_v45 }
 0x1f2   :  { %1723 = vmatpush3.bf16.msra.mxu1 %v2245_v48 }
 0x1f3   :  { %1761 = vmatprep.subr.bf16.mxu1 %v2258_v52 }
 0x2a8   :  { %v1531_v17 = vpop.f32.mrb[2].mxu1 }
 0x2a9   :  { %v1532_v18 = vpop.f32.mrb[3].mxu1 }
 0x2aa   :  { %v1533_v21 = vadd.f32 %v1532_v18, %v1531_v17 }
 0x2ac   :  { %1459 = vmatmul.mubr.msk.f32.vlgmr.msra.gmra.mrb[2].mxu0 %vm192_vm0, %v1533_v21 }
 0x2ad   :  { %806 = vmatprep.mubr.f32.mxu0 %v2038_v56 }
 0x37f   :  { %v410_v31 = vpop.f32.mrb[2].mxu0 }
 0x380   :  { %v411_v34 = vadd.f32 1e-05, %v410_v31  ;;  %v412_v35 = vpop.f32.mrb[3].mxu0 }
 0x381   :  { %v413_v36 = vadd.f32 1e-05, %v412_v35 }
 0x382   :  { %1988 = vrsqrt.f32 %v411_v34 }
 0x383   :  { %1990 = vrsqrt.f32 %v413_v36 }
 0x38c   :  { %v1989_v42 = vpop.eup %1988 }
 0x38d   :  { %v1991_v46 = vpop.eup %1990  ;;  %v417_v49 = vmul.f32 %v1989_v42, %v2292_v61 }
 0x38e   :  { %v418_v51 = vmul.f32 %v1991_v46, %v2295_v63 }
 0x38f   :  { %v419_v53 = vmul.f32 %v417_v49, %v2362_v41 }
 0x390   :  { %v420_v54 = vmul.f32 %v418_v51, %v2364_v43 }
 0x391   :  { %v421_v57 = vadd.f32 %v419_v53, %v2366_v47 }
 0x392   :  { %v2376_v58 = vadd.f32 %v420_v54, %v2369_v50  ;;  %v2383_v54 = vpop.permute.xlu0 %533 }
 0x393   :  { %v425_v59 = vmul.f32 0.70710677, %v421_v57 }
 0x394   :  { %v426_v60 = vmul.f32 0.70710677, %v2376_v58 }
 0x395   :  { %v431_v62 = vand.u32 2147483647, %v425_v59  ;;  %vm427_vm1 = vcmp.ge.f32.partialorder %v425_v59, 0.0 }
 0x396   :  { %v432_v0 = vand.u32 2147483647, %v426_v60  ;;  %vm428_vm2 = vcmp.ge.f32.partialorder %v426_v60, 0.0  ;;  %v424_v60 = vmul.f32 0.5, %v2376_v58 }
 0x397   :  { %v433_v1 = vmul.f32 0.3275911, %v431_v62  ;;  %v459_v63 = vsub.f32 0.0, %v431_v62 }
 0x398   :  { %v434_v61 = vmul.f32 0.3275911, %v432_v0  ;;  %v460_v5 = vsub.f32 0.0, %v432_v0 }
 0x399   :  { %v435_v2 = vadd.f32 1.0, %v433_v1  ;;  %v461_v9 = vmul.f32 %v459_v63, %v431_v62  ;;  %v536_v62 = vpop.permute.xlu1 %535 }
 0x39a   :  { %v436_v4 = vadd.f32 1.0, %v434_v61  ;;  %v462_v12 = vmul.f32 %v460_v5, %v432_v0 }
 0x39b   :  { %1992 = vrcp.f32 %v435_v2  ;;  %v463_v18 = vmul.f32 1.442695, %v461_v9 }
 0x39c   :  { %1994 = vrcp.f32 %v436_v4  ;;  %v465_v34 = vmul.f32 1.442695, %v462_v12 }
 0x39d   :  { %1996 = vpow2.f32 %v463_v18  ;;  %v548_v12 = vpop.permute.xlu1 %547  ;;  %v2661_v18 = vmov -1.0  }
 0x39e   :  { %1998 = vpow2.f32 %v465_v34 }
 0x3a5   :  { %v1993_v6 = vpop.eup %1992 }
 0x3a6   :  { %v1995_v10 = vpop.eup %1994  ;;  %v441_v11 = vmul.f32 1.0614054, %v1993_v6 }
 0x3a7   :  { %v442_v16 = vmul.f32 1.0614054, %v1995_v10  ;;  %v1997_v4 = vpop.eup %1996 }
 0x3a8   :  { %v443_v17 = vadd.f32 -1.4531521, %v441_v11  ;;  %v1999_v5 = vpop.eup %1998  ;;  %v2385_v11 = vpop.permute.xlu0 %545 }
 0x3a9   :  { %v444_v21 = vadd.f32 -1.4531521, %v442_v16 }
 0x3aa   :  { %v445_v31 = vmul.f32 %v1993_v6, %v443_v17 }
 0x3ab   :  { %v446_v35 = vmul.f32 %v1995_v10, %v444_v21  ;;  %v429_v21 = vsel %vm427_vm1, 1.0, %v2661_v18 }
 0x3ac   :  { %v447_v36 = vadd.f32 1.4214138, %v445_v31 }
 0x3ad   :  { %v448_v40 = vadd.f32 1.4214138, %v446_v35  ;;  %v430_v35 = vsel %vm428_vm2, 1.0, %v2661_v18 }
 0x3ae   :  { %v449_v42 = vmul.f32 %v1993_v6, %v447_v36 }
 0x3af   :  { %v450_v46 = vmul.f32 %v1995_v10, %v448_v40  ;;  %v2389_v40 = vpop.permute.xlu1 %484 }
 0x3b0   :  { %v451_v49 = vadd.f32 -0.28449672, %v449_v42 }
 0x3b1   :  { %v452_v51 = vadd.f32 -0.28449672, %v450_v46 }
 0x3b2   :  { %v453_v53 = vmul.f32 %v1993_v6, %v451_v49  ;;  %v2395_v49 = vsel %vm510_vm4, %v2333_v22, %v2338_v24 }
 0x3b3   :  { %v454_v0 = vmul.f32 %v1995_v10, %v452_v51  ;;  %v2398_v51 = vsel %vm537_vm5, %v2383_v54, %v536_v62 }
 0x3b4   :  { %v455_v1 = vadd.f32 0.2548296, %v453_v53 }
 0x3b5   :  { %v456_v61 = vadd.f32 0.2548296, %v454_v0  ;;  %v2406_v0 = vsel %vm525_vm6, %v2381_v37, %v2347_v29 }
 0x3b6   :  { %v457_v2 = vmul.f32 %v1993_v6, %v455_v1  ;;  %v423_v6 = vmul.f32 0.5, %v421_v57  ;;  %v2402_v57 = vsel %vm498_vm3, %v2342_v25, %v2379_v15 }
 0x3b7   :  { %v458_v63 = vmul.f32 %v1995_v10, %v456_v61  ;;  %v483_v10 = vpop.permute.xlu0 %482 }
 0x3b8   :  { %v467_v9 = vmul.f32 %v1997_v4, %v457_v2  ;;  %v2410_v58 = vsel %vm486_vm7, %v483_v10, %v2389_v40 }
 0x3b9   :  { %v468_v16 = vmul.f32 %v1999_v5, %v458_v63 }
 0x3ba   :  { %v469_v17 = vsub.f32 1.0, %v467_v9 }
 0x3bb   :  { %v470_v31 = vsub.f32 1.0, %v468_v16 }
 0x3bc   :  { %v471_v34 = vmul.f32 %v469_v17, %v429_v21 }
 0x3bd   :  { %v472_v36 = vmul.f32 %v470_v31, %v430_v35 }
 0x3be   :  { %v473_v59 = vadd.f32 1.0, %v471_v34 }
 0x3bf   :  { %v474_v42 = vadd.f32 1.0, %v472_v36  ;;  %v2426_v36 = vmul.f32 0.0, %v536_v62 }
 0x3c0   :  { %v475_v46 = vmul.f32 %v473_v59, %v423_v6  ;;  %v2436_v59 = vsel %vm549_vm8, %v2385_v11, %v548_v12 }
 0x3c1   :  { %v476_v53 = vmul.f32 %v474_v42, %v424_v60  ;;  %v2438_v60 = vmul.f32 0.0, %v548_v12  ;;  %v2052_v42 = vmov 0   ;;  %v572_v12 = vpop.permute.xlu0 %571 }
 0x3c2   :  { %v504_v1 = vmul.f32 %v2402_v57, %v475_v46  ;;  %v516_v22 = vmul.f32 %v2395_v49, %v475_v46  ;;  %v530_v61 = vmul.f32 %v2381_v37, %v475_v46  ;;  %v542_v2 = vmul.f32 %v2383_v54, %v475_v46  ;;  %1891 = vset.pattern.permute.xlu1 %v2052_v42 }
 0x3c3   :  { %v505_v4 = vmul.f32 %v2379_v15, %v476_v53  ;;  %v517_v25 = vmul.f32 %v2338_v24, %v476_v53  ;;  %v531_v63 = vmul.f32 %v2406_v0, %v476_v53  ;;  %v543_v29 = vmul.f32 %v2398_v51, %v476_v53  ;;  %1987 = vset.pattern.permute.xlu0 %v2052_v42 }
 0x3c4   :  { %v492_v5 = vmul.f32 %v2410_v58, %v475_v46  ;;  %v493_v9 = vmul.f32 %v2389_v40, %v476_v53  ;;  %v1811_v16 = vpack.i.bf16 %v476_v53, %v475_v46  ;;  %v554_v6 = vmul.f32 %v2385_v11, %v475_v46  ;;  %v561_v46 = vpop.permute.xlu1 %560 }
 0x3c5   :  { %v1816_v17 = vpack.i.bf16 %v517_v25, %v516_v22  ;;  %v1821_v21 = vpack.i.bf16 %v531_v63, %v530_v61  ;;  %v1806_v31 = vpack.i.bf16 %v505_v4, %v504_v1  ;;  %v1826_v34 = vpack.i.bf16 %v543_v29, %v542_v2  ;;  %v605_v1 = vpop.permute.xlu0 %604 }
 0x3c6   :  { %v1831_v35 = vpack.i.bf16 %v493_v9, %v492_v5  ;;  %1812 = vrot.lane.b32.xlu1 %v1811_v16, %s2049_s5  ;;  %1797 = vrot.lane.b32.xlu0 %v1811_v16, %s2040_s18  ;;  %v555_v62 = vmul.f32 %v2436_v59, %v476_v53  ;;  %v2450_v53 = vmul.f32 0.0, %v483_v10 }
 0x3c8   :  { %v584_v22 = vpop.permute.xlu1 %583 }
 0x3ca   :  { %1802 = vrot.lane.b32.xlu0 %v1811_v16, %s2044_s21  ;;  %1817 = vrot.lane.b32.xlu1 %v1816_v17, %s2045_s22 }
 0x3ce   :  { %1822 = vrot.lane.b32.xlu1 %v1821_v21, %s2047_s24  ;;  %1807 = vrot.lane.b32.xlu0 %v1806_v31, %s2046_s23 }
 0x3d2   :  { %1827 = vrot.lane.b32.xlu1 %v1826_v34, %s2050_s6  ;;  %616 = vrot.lane.b32.xlu0 %v2426_v36, %s2050_s6 }
 0x3d6   :  { %636 = vrot.lane.b32.xlu1 %v554_v6, %s2051_s29  ;;  %628 = vrot.lane.b32.xlu0 %v2038_v56, %s2049_s5 }
 0x3da   :  { %640 = vrot.lane.b32.xlu1 %v2438_v60, %s2051_s29  ;;  %638 = vrot.lane.b32.xlu0 %v555_v62, %s2051_s29 }
 0x3de   :  { %1832 = vrot.lane.b32.xlu0 %v1831_v35, %s2043_s2 }
 0x438   :  { %v2448_v61 = vpop.permute.xlu1 %1812  ;;  %v1798_v2 = vpop.permute.xlu0 %1797 }
 0x439   :  { %v1800_v4 = vunpack.i.h.bf16 %v1798_v2  ;;  %v1799_v25 = vunpack.i.l.bf16 %v1798_v2 }
 0x43b   :  { %v567_v63 = vsel %vm510_vm4, %v1799_v25, %v1800_v4  ;;  %v566_v29 = vsel %vm510_vm4, %v561_v46, %v1799_v25 }
 0x43c   :  { %v1841_v5 = vpack.i.bf16 %v1800_v4, %v567_v63  ;;  %v1803_v9 = vpop.permute.xlu0 %1802  ;;  %v1818_v16 = vpop.permute.xlu1 %1817  ;;  %v1836_v17 = vpack.i.bf16 %v566_v29, %v2450_v53 }
 0x43d   :  { %v1805_v21 = vunpack.i.h.bf16 %v1803_v9  ;;  %v1804_v31 = vunpack.i.l.bf16 %v1803_v9  ;;  %v1820_v34 = vunpack.i.h.bf16 %v1818_v16  ;;  %v1819_v35 = vunpack.i.l.bf16 %v1818_v16 }
 0x43e   :  { %1842 = vrot.lane.b32.xlu1 %v1841_v5, %s2043_s2  ;;  %1837 = vrot.lane.b32.xlu0 %v1836_v17, %s2043_s2 }
 0x43f   :  { %v596_v10 = vsel %vm486_vm7, %v1804_v31, %v1805_v21  ;;  %v591_v46 = vsel %vm589_vm9, %v1819_v35, %v1820_v34  ;;  %v590_v63 = vsel %vm589_vm9, %v584_v22, %v1819_v35 }
 0x440   :  { %v1846_v6 = vpack.i.bf16 %v1805_v21, %v596_v10  ;;  %v1823_v62 = vpop.permute.xlu1 %1822  ;;  %v1808_v42 = vpop.permute.xlu0 %1807  ;;  %v1861_v29 = vpack.i.bf16 %v1820_v34, %v591_v46 }
 0x441   :  { %v1810_v2 = vunpack.i.h.bf16 %v1808_v42  ;;  %v1809_v4 = vunpack.i.l.bf16 %v1808_v42  ;;  %v1825_v5 = vunpack.i.h.bf16 %v1823_v62  ;;  %v1824_v9 = vunpack.i.l.bf16 %v1823_v62 }
 0x442   :  { %1847 = vrot.lane.b32.xlu0 %v1846_v6, %s2043_s2  ;;  %v1815_v42 = vunpack.i.h.bf16 %v2448_v61  ;;  %v1814_v6 = vunpack.i.l.bf16 %v2448_v61 }
 0x443   :  { %v578_v25 = vsel %vm577_vm10, %v572_v12, %v1809_v4  ;;  %v579_v21 = vsel %vm577_vm10, %v1809_v4, %v1810_v2  ;;  %v1866_v12 = vpack.i.bf16 %v1824_v9, %v1804_v31  ;;  %v607_v34 = vsel %vm606_vm11, %v1824_v9, %v1825_v5 }
 0x444   :  { %v617_v16 = vpop.permute.xlu0 %616  ;;  %v1851_v17 = vpack.i.bf16 %v590_v63, %v578_v25  ;;  %v1828_v10 = vpop.permute.xlu1 %1827  ;;  %v1856_v18 = vpack.i.bf16 %v1810_v2, %v579_v21  ;;  %v608_v4 = vsel %vm606_vm11, %v1825_v5, %v605_v1  ;;  %v631_v25 = vsel %vm630_vm12, %v1814_v6, %v1815_v42  ;;  %v93_v21 = vld [vmem:[%s2656_s4] sm:$0xff] }
 0x445   :  { %v1830_v35 = vunpack.i.h.bf16 %v1828_v10  ;;  %v1829_v62 = vunpack.i.l.bf16 %v1828_v10  ;;  %v1876_v31 = vpack.i.bf16 %v608_v4, %v607_v34 }
 0x446   :  { %1852 = vrot.lane.b32.xlu1 %v1851_v17, %s2043_s2  ;;  %1862 = vrot.lane.b32.xlu0 %v1861_v29, %s2043_s2 }
 0x447   :  { %v619_v2 = vsel %vm618_vm13, %v1829_v62, %v1830_v35  ;;  %v620_v63 = vsel %vm618_vm13, %v1830_v35, %v617_v16  ;;  %v1886_v9 = vpack.i.bf16 %v1814_v6, %v1829_v62 }
 0x448   :  { %v629_v22 = vpop.permute.xlu0 %628  ;;  %v1881_v1 = vpack.i.bf16 %v620_v63, %v619_v2  ;;  %v637_v5 = vpop.permute.xlu1 %636 }
 0x449   :  { %v632_v46 = vsel %vm630_vm12, %v1815_v42, %v629_v22 }
 0x44a   :  { %1857 = vrot.lane.b32.xlu1 %v1856_v18, %s2043_s2  ;;  %1867 = vrot.lane.b32.xlu0 %v1866_v12, %s2043_s2  ;;  %v1871_v61 = vpack.i.bf16 %v632_v46, %v631_v25 }
 0x44c   :  { %v639_v29 = vpop.permute.xlu0 %638  ;;  %v641_v17 = vpop.permute.xlu1 %640 }
 0x44d   :  { %v643_v18 = vsel %vm642_vm14, %v637_v5, %v639_v29  ;;  %v644_v16 = vsel %vm642_vm14, %v639_v29, %v641_v17 }
 0x44e   :  { %1877 = vrot.lane.b32.xlu1 %v1876_v31, %s2043_s2  ;;  %1872 = vrot.lane.b32.xlu0 %v1871_v61, %s2043_s2 }
 0x450   :  { %v1833_v10 = vpop.permute.xlu0 %1832 }
 0x451   :  { %v1835_v42 = vunpack.i.h.bf16 %v1833_v10  ;;  %v1834_v6 = vunpack.i.l.bf16 %v1833_v10 }
 0x452   :  { %1882 = vrot.lane.b32.xlu1 %v1881_v1, %s2043_s2  ;;  %698 = vrot.lane.b32.xlu0 %v643_v18, %s2043_s2 }
 0x456   :  { %1887 = vrot.lane.b32.xlu1 %v1886_v9, %s2043_s2  ;;  %696 = vrot.lane.b32.xlu0 %v637_v5, %s2043_s2 }
 0x45a   :  { %700 = vrot.lane.b32.xlu1 %v644_v16, %s2043_s2  ;;  %1207 = vrot.lane.b32.xlu0 %v2345_v28, %s2046_s23 }
 0x45e   :  { %96 = vperm.xlu1 %1891, %v93_v21   ;;  %1238 = vrot.lane.b32.xlu0 %v2350_v30, %s2047_s24  ;;  %v703_v30 = vsel %vm549_vm8, %v1834_v6, %v1835_v42 }
 0x462   :  { %1196 = vrot.lane.b32.xlu1 %v2038_v56, %s2040_s18 }
 0x466   :  { %1218 = vrot.lane.b32.xlu1 %v2336_v23, %s2045_s22 }
 0x4b0   :  { %v1843_v12 = vpop.permute.xlu1 %1842  ;;  %v1838_v22 = vpop.permute.xlu0 %1837 }
 0x4b1   :  { %v1845_v28 = vunpack.i.h.bf16 %v1843_v12  ;;  %v1844_v34 = vunpack.i.l.bf16 %v1843_v12  ;;  %v1840_v35 = vunpack.i.h.bf16 %v1838_v22  ;;  %v1839_v62 = vunpack.i.l.bf16 %v1838_v22 }
 0x4b3   :  { %v704_v46 = vsel %vm549_vm8, %v1840_v35, %v1844_v34  ;;  %v702_v4 = vsel %vm549_vm8, %v1839_v62, %v1834_v6  ;;  %v705_v25 = vsel %vm549_vm8, %v1844_v34, %v1845_v28 }
 0x4b4   :  { %v1678_v61 = vpack.c.bf16 %v704_v46, %v702_v4  ;;  %v1848_v31 = vpop.permute.xlu0 %1847  ;;  %v1676_v23 = vpack.c.bf16 %v705_v25, %v703_v30 }
 0x4b5   :  { %v1850_v10 = vunpack.i.h.bf16 %v1848_v31  ;;  %v1849_v12 = vunpack.i.l.bf16 %v1848_v31 }
 0x4b6   :  { %1677 = vmatprep.subr.bf16.mxu0 %v1676_v23 }
 0x4b7   :  { %1679 = vmatpush1.bf16.msra.mxu0 %v1678_v61  ;;  %v711_v31 = vsel %vm549_vm8, %v1849_v12, %v1850_v10 }
 0x4b8   :  { %v1853_v2 = vpop.permute.xlu1 %1852  ;;  %v1863_v63 = vpop.permute.xlu0 %1862 }
 0x4b9   :  { %v1855_v29 = vunpack.i.h.bf16 %v1853_v2  ;;  %v1865_v1 = vunpack.i.h.bf16 %v1863_v63  ;;  %v1864_v5 = vunpack.i.l.bf16 %v1863_v63  ;;  %v1854_v17 = vunpack.i.l.bf16 %v1853_v2 }
 0x4bb   :  { %v708_v6 = vsel %vm549_vm8, %v1855_v29, %v1864_v5  ;;  %v709_v34 = vsel %vm549_vm8, %v1864_v5, %v1865_v1 }
 0x4bc   :  { %v1858_v18 = vpop.permute.xlu1 %1857  ;;  %v1868_v9 = vpop.permute.xlu0 %1867 }
 0x4bd   :  { %v1860_v16 = vunpack.i.h.bf16 %v1858_v18  ;;  %v1859_v21 = vunpack.i.l.bf16 %v1858_v18  ;;  %v1869_v42 = vunpack.i.l.bf16 %v1868_v9  ;;  %v1870_v30 = vunpack.i.h.bf16 %v1868_v9 }
 0x4bf   :  { %v706_v22 = vsel %vm549_vm8, %v1854_v17, %v1859_v21  ;;  %v707_v28 = vsel %vm549_vm8, %v1859_v21, %v1860_v16  ;;  %v710_v23 = vsel %vm549_vm8, %v1869_v42, %v1849_v12 }
 0x4c0   :  { %v1682_v35 = vpack.c.bf16 %v708_v6, %v706_v22  ;;  %v1878_v62 = vpop.permute.xlu1 %1877  ;;  %v1873_v46 = vpop.permute.xlu0 %1872  ;;  %v1680_v4 = vpack.c.bf16 %v709_v34, %v707_v28 }
 0x4c1   :  { %v1880_v25 = vunpack.i.h.bf16 %v1878_v62  ;;  %v1879_v61 = vunpack.i.l.bf16 %v1878_v62  ;;  %v1875_v63 = vunpack.i.h.bf16 %v1873_v46  ;;  %v1874_v29 = vunpack.i.l.bf16 %v1873_v46 }
 0x4c2   :  { %1681 = vmatprep.subr.bf16.mxu0 %v1680_v4 }
 0x4c3   :  { %v712_v2 = vsel %vm549_vm8, %v1870_v30, %v1879_v61  ;;  %1683 = vmatpush1.bf16.msra.mxu0 %v1682_v35  ;;  %v713_v18 = vsel %vm549_vm8, %v1879_v61, %v1880_v25  ;;  %v717_v42 = vsel %vm549_vm8, %v1874_v29, %v1875_v63  ;;  %v2515_v25 = vld [vmem:[%s2655_s3] sm:$0xff]  ;;  %s2053_s3 = smov [#allocation3]  }
 0x4c4   :  { %v1686_v1 = vpack.c.bf16 %v712_v2, %v710_v23  ;;  %v1883_v5 = vpop.permute.xlu1 %1882  ;;  %v1684_v17 = vpack.c.bf16 %v713_v18, %v711_v31  ;;  %v699_v6 = vpop.permute.xlu0 %698  ;;  %s1449_s0 = sshll.u32 %s2053_s3, 4  ;;  %s1450_s0 = int_to_ptr.vmem [resolvable:$true] %s1449_s0 }
 0x4c5   :  { %v1885_v16 = vunpack.i.h.bf16 %v1883_v5  ;;  %v1884_v21 = vunpack.i.l.bf16 %v1883_v5  ;;  %s2014_s14 = scalar_lea.vmem %s1450_s0, 256  ;;  %p2019_p1 = scmp.lt.s32.totalorder %s1450_s0, %s1450_s0 }
 0x4c6   :  { %1685 = vmatprep.subr.bf16.mxu0 %v1684_v17  ;;  %p2015_p0 = scmp.ne.s32.totalorder %s1450_s0, %s2014_s14  ;;  %p2020_p2 = scmp.lt.s32.totalorder %s2014_s14, %s2014_s14 }
 0x4c7   :  { %1687 = vmatpush1.bf16.msra.mxu0 %v1686_v1  ;;  %v715_v9 = vsel %vm549_vm8, %v1884_v21, %v1885_v16 }
 0x4c8   :  { %v1888_v10 = vpop.permute.xlu1 %1887  ;;  %v1688_v12 = vpack.c.bf16 %v717_v42, %v715_v9  ;;  %v697_v30 = vpop.permute.xlu0 %696  ;;  %p2021_p3 = por %p2020_p2, %p2019_p1 }
 0x4c9   :  { %v1890_v22 = vunpack.i.h.bf16 %v1888_v10  ;;  %v1889_v28 = vunpack.i.l.bf16 %v1888_v10  ;;  %v718_v61 = vsel %vm549_vm8, %v697_v30, %v699_v6 }
 0x4ca   :  { %1689 = vmatprep.subr.bf16.mxu0 %v1688_v12  ;;  %p2022_p4 = pnand %p2021_p3, %p2015_p0 }
 0x4cb   :  { %v714_v34 = vsel %vm549_vm8, %v1889_v28, %v1884_v21  ;;  %v716_v35 = vsel %vm549_vm8, %v1890_v22, %v1874_v29 }
 0x4cc   :  { %v1690_v62 = vpack.c.bf16 %v716_v35, %v714_v34  ;;  %v701_v46 = vpop.permute.xlu1 %700 }
 0x4cd   :  { %v719_v4 = vsel %vm549_vm8, %v699_v6, %v701_v46 }
 0x4ce   :  { %1691 = vmatpush1.bf16.msra.mxu0 %v1690_v62 }
 0x4cf   :  { %758 = vmatprep.subr.mxu0 %v719_v4 }
 0x4d2   :  { %759 = vmatpush1.msra.mxu0 %v718_v61 }
 0x4d3   :  { %1460 = vmatmul.mubr.msk.f32.vlgmr.msra.gmra.mrb[4].mxu0 %vm738_vm15, %v2515_v25  ;;  %1725 = vmatprep.subr.bf16.mxu0 %v2258_v52 }
 0x4d4   :  { %1727 = vmatpush1.bf16.msra.mxu0 %v2266_v55  ;;  %950 = vmatprep.mubr.f32.mxu0 %v2038_v56 }
 0x4d5   :  { %1729 = vmatprep.subr.bf16.mxu0 %v2108_v3 }
 0x4dd   :  { %v2524_v31 = vpop.permute.xlu1 %96 }
 0x5a6   :  { %v808_v23 = vpop.f32.mrb[4].mxu0 }
 0x5a7   :  { %v810_v2 = vpop.f32.mrb[5].mxu0  ;;  %v809_v29 = vadd.f32 %v808_v23, %v2524_v31 }
 0x5a8   :  { %v811_v63 = vadd.f32 %v810_v2, %v2524_v31 }
 0x5aa   :  { %877 = vmatprep.mubr.f32.mxu1 %v811_v63 }
 0x5ab   :  { %878 = vmatmul.mubr.f32.vlgmr.msra.gmra.mrb[4].mxu1 %v809_v29 }
 0x5ac   :  { %1763 = vmatpush1.bf16.msra.mxu1 %v2266_v55  ;;  %1098 = vmatprep.mubr.f32.mxu1 %v2038_v56 }
 0x67e   :  { %v1566_v52 = vpop.f32.mrb[4].mxu1 }
 0x67f   :  { %v1567_v18 = vpop.f32.mrb[5].mxu1 }
 0x680   :  { %v1568_v1 = vadd.f32 %v1567_v18, %v1566_v52 }
 0x682   :  { %1461 = vmatmul.mubr.msk.f32.vlgmr.msra.gmra.mrb[6].mxu0 %vm192_vm0, %v1568_v1 }
 0x683   :  { %1731 = vmatpush3.bf16.msra.mxu0 %v2119_v7 }
 0x684   :  { %1733 = vmatprep.subr.bf16.mxu0 %v2121_v8 }
 0x687   :  { %1735 = vmatpush3.bf16.msra.mxu0 %v2137_v13 }
 0x688   :  { %1737 = vmatprep.subr.bf16.mxu0 %v2140_v14 }
 0x68b   :  { %1739 = vmatpush3.bf16.msra.mxu0 %v2155_v19 }
 0x68c   :  { %1741 = vmatprep.subr.bf16.mxu0 %v2158_v20 }
 0x68f   :  { %1743 = vmatpush3.bf16.msra.mxu0 %v2179_v26 }
 0x690   :  { %1745 = vmatprep.subr.bf16.mxu0 %v2182_v27 }
 0x693   :  { %1747 = vmatpush3.bf16.msra.mxu0 %v2197_v32 }
 0x694   :  { %1749 = vmatprep.subr.bf16.mxu0 %v2200_v33 }
 0x697   :  { %1751 = vmatpush3.bf16.msra.mxu0 %v2215_v38 }
 0x698   :  { %1753 = vmatprep.subr.bf16.mxu0 %v2218_v39 }
 0x69b   :  { %1755 = vmatpush3.bf16.msra.mxu0 %v2233_v44 }
 0x69c   :  { %1757 = vmatprep.subr.bf16.mxu0 %v2236_v45 }
 0x69f   :  { %1759 = vmatpush3.bf16.msra.mxu0 %v2245_v48 }
 0x755   :  { %v952_v3 = vpop.f32.mrb[6].mxu0 }
 0x756   :  { %v957_v7 = vsub.f32 %v809_v29, %v952_v3  ;;  %v954_v8 = vpop.f32.mrb[7].mxu0 }
 0x757   :  { %v958_v13 = vsub.f32 %v811_v63, %v954_v8 }
 0x758   :  { %v959_v19 = vmul.f32 %v957_v7, %v957_v7 }
 0x759   :  { %v960_v14 = vmul.f32 %v958_v13, %v958_v13 }
 0x75b   :  { %1025 = vmatprep.mubr.f32.mxu0 %v960_v14 }
 0x75c   :  { %1026 = vmatmul.mubr.f32.vlgmr.msra.gmra.mrb[8].mxu0 %v959_v19 }
 0x82f   :  { %v1601_v20 = vpop.f32.mrb[8].mxu0 }
 0x830   :  { %v1602_v26 = vpop.f32.mrb[9].mxu0 }
 0x831   :  { %v1603_v27 = vadd.f32 %v1602_v26, %v1601_v20 }
 0x833   :  { %1462 = vmatmul.mubr.msk.f32.vlgmr.msra.gmra.mrb[6].mxu1 %vm192_vm0, %v1603_v27 }
 0x834   :  { %1432 = vmatprep.mubr.f32.mxu1 %v2038_v56 }
 0x906   :  { %v1100_v32 = vpop.f32.mrb[6].mxu1 }
 0x907   :  { %v1101_v33 = vadd.f32 1e-05, %v1100_v32  ;;  %v1102_v38 = vpop.f32.mrb[7].mxu1 }
 0x908   :  { %v1103_v39 = vadd.f32 1e-05, %v1102_v38 }
 0x909   :  { %2000 = vrsqrt.f32 %v1101_v33 }
 0x90a   :  { %2002 = vrsqrt.f32 %v1103_v39 }
 0x913   :  { %v2001_v44 = vpop.eup %2000 }
 0x914   :  { %v2003_v45 = vpop.eup %2002  ;;  %v1107_v48 = vmul.f32 %v2001_v44, %v957_v7 }
 0x915   :  { %v1108_v55 = vmul.f32 %v2003_v45, %v958_v13  ;;  %v2663_v45 = vmov -1.0  }
 0x916   :  { %v1109_v5 = vmul.f32 %v1107_v48, %v2362_v41 }
 0x917   :  { %v1110_v17 = vmul.f32 %v1108_v55, %v2364_v43 }
 0x918   :  { %v1111_v16 = vadd.f32 %v1109_v5, %v2366_v47 }
 0x919   :  { %v1112_v21 = vadd.f32 %v1110_v17, %v2369_v50 }
 0x91a   :  { %v1115_v9 = vmul.f32 0.70710677, %v1111_v16 }
 0x91b   :  { %v1116_v42 = vmul.f32 0.70710677, %v1112_v21 }
 0x91c   :  { %v1121_v6 = vand.u32 2147483647, %v1115_v9  ;;  %vm1117_vm0 = vcmp.ge.f32.partialorder %v1115_v9, 0.0 }
 0x91d   :  { %v1122_v10 = vand.u32 2147483647, %v1116_v42  ;;  %vm1118_vm1 = vcmp.ge.f32.partialorder %v1116_v42, 0.0  ;;  %v1119_v48 = vsel %vm1117_vm0, 1.0, %v2663_v45 }
 0x91e   :  { %v1123_v12 = vmul.f32 0.3275911, %v1121_v6  ;;  %v1149_v35 = vsub.f32 0.0, %v1121_v6  ;;  %v1120_v17 = vsel %vm1118_vm1, 1.0, %v2663_v45 }
 0x91f   :  { %v1124_v22 = vmul.f32 0.3275911, %v1122_v10  ;;  %v1150_v62 = vsub.f32 0.0, %v1122_v10 }
 0x920   :  { %v1125_v28 = vadd.f32 1.0, %v1123_v12  ;;  %v1151_v41 = vmul.f32 %v1149_v35, %v1121_v6 }
 0x921   :  { %v1126_v34 = vadd.f32 1.0, %v1124_v22  ;;  %v1152_v30 = vmul.f32 %v1150_v62, %v1122_v10  ;;  %v1113_v10 = vmul.f32 0.5, %v1111_v16  ;;  %v1114_v22 = vmul.f32 0.5, %v1112_v21 }
 0x922   :  { %2004 = vrcp.f32 %v1125_v28  ;;  %v1153_v50 = vmul.f32 1.442695, %v1151_v41 }
 0x923   :  { %2006 = vrcp.f32 %v1126_v34  ;;  %v1155_v63 = vmul.f32 1.442695, %v1152_v30 }
 0x924   :  { %2008 = vpow2.f32 %v1153_v50 }
 0x925   :  { %2010 = vpow2.f32 %v1155_v63 }
 0x92c   :  { %v2005_v46 = vpop.eup %2004 }
 0x92d   :  { %v2007_v4 = vpop.eup %2006  ;;  %v1131_v43 = vmul.f32 1.0614054, %v2005_v46 }
 0x92e   :  { %v1132_v47 = vmul.f32 1.0614054, %v2007_v4  ;;  %v2009_v27 = vpop.eup %2008 }
 0x92f   :  { %v1133_v61 = vadd.f32 -1.4531521, %v1131_v43  ;;  %v2011_v33 = vpop.eup %2010 }
 0x930   :  { %v1134_v23 = vadd.f32 -1.4531521, %v1132_v47 }
 0x931   :  { %v1135_v2 = vmul.f32 %v2005_v46, %v1133_v61 }
 0x932   :  { %v1136_v29 = vmul.f32 %v2007_v4, %v1134_v23 }
 0x933   :  { %v1137_v52 = vadd.f32 1.4214138, %v1135_v2 }
 0x934   :  { %v1138_v18 = vadd.f32 1.4214138, %v1136_v29 }
 0x935   :  { %v1139_v1 = vmul.f32 %v2005_v46, %v1137_v52 }
 0x936   :  { %v1140_v3 = vmul.f32 %v2007_v4, %v1138_v18 }
 0x937   :  { %v1141_v7 = vadd.f32 -0.28449672, %v1139_v1 }
 0x938   :  { %v1142_v8 = vadd.f32 -0.28449672, %v1140_v3 }
 0x939   :  { %v1143_v13 = vmul.f32 %v2005_v46, %v1141_v7 }
 0x93a   :  { %v1144_v14 = vmul.f32 %v2007_v4, %v1142_v8 }
 0x93b   :  { %v1145_v19 = vadd.f32 0.2548296, %v1143_v13 }
 0x93c   :  { %v1146_v20 = vadd.f32 0.2548296, %v1144_v14 }
 0x93d   :  { %v1147_v26 = vmul.f32 %v2005_v46, %v1145_v19 }
 0x93e   :  { %v1148_v32 = vmul.f32 %v2007_v4, %v1146_v20 }
 0x93f   :  { %v1157_v38 = vmul.f32 %v2009_v27, %v1147_v26 }
 0x940   :  { %v1158_v39 = vmul.f32 %v2011_v33, %v1148_v32 }
 0x941   :  { %v1159_v44 = vsub.f32 1.0, %v1157_v38 }
 0x942   :  { %v1160_v55 = vsub.f32 1.0, %v1158_v39 }
 0x943   :  { %v1161_v5 = vmul.f32 %v1159_v44, %v1119_v48 }
 0x944   :  { %v1162_v6 = vmul.f32 %v1160_v55, %v1120_v17 }
 0x945   :  { %v1163_v12 = vadd.f32 1.0, %v1161_v5 }
 0x946   :  { %v1164_v28 = vadd.f32 1.0, %v1162_v6 }
 0x947   :  { %v1165_v34 = vmul.f32 %v1163_v12, %v1113_v10 }
 0x948   :  { %v1166_v35 = vmul.f32 %v1164_v28, %v1114_v22 }
 0x949   :  { %v1179_v62 = vmul.f32 %v1165_v34, %v2395_v49  ;;  %v1184_v9 = vmul.f32 %v1165_v34, %v2381_v37  ;;  %v1176_v42 = vmul.f32 %v1165_v34, %v2402_v57  ;;  %v1187_v46 = vmul.f32 %v1165_v34, %v2383_v54 }
 0x94a   :  { %v1907_v41 = vpack.i.bf16 %v1166_v35, %v1165_v34  ;;  %v1180_v4 = vmul.f32 %v1166_v35, %v2338_v24  ;;  %v1185_v43 = vmul.f32 %v1166_v35, %v2406_v0  ;;  %v1177_v16 = vmul.f32 %v1166_v35, %v2379_v15 }
 0x94b   :  { %v1188_v21 = vmul.f32 %v1166_v35, %v2398_v51  ;;  %v1173_v37 = vmul.f32 %v1165_v34, %v2410_v58  ;;  %v1174_v54 = vmul.f32 %v1166_v35, %v2389_v40  ;;  %v1190_v24 = vmul.f32 %v1165_v34, %v2385_v11  ;;  %v1208_v40 = vpop.permute.xlu0 %1207  ;;  %v1197_v51 = vpop.permute.xlu1 %1196 }
 0x94c   :  { %1908 = vrot.lane.b32.xlu1 %v1907_v41, %s2049_s5  ;;  %1893 = vrot.lane.b32.xlu0 %v1907_v41, %s2040_s18  ;;  %v1912_v49 = vpack.i.bf16 %v1180_v4, %v1179_v62  ;;  %v1917_v30 = vpack.i.bf16 %v1185_v43, %v1184_v9  ;;  %v1902_v57 = vpack.i.bf16 %v1177_v16, %v1176_v42 }
 0x94d   :  { %v1922_v47 = vpack.i.bf16 %v1188_v21, %v1187_v46  ;;  %v1927_v61 = vpack.i.bf16 %v1174_v54, %v1173_v37  ;;  %v1191_v15 = vmul.f32 %v1166_v35, %v2436_v59 }
 0x94f   :  { %v1239_v0 = vpop.permute.xlu0 %1238  ;;  %v1219_v58 = vpop.permute.xlu1 %1218 }
 0x950   :  { %1898 = vrot.lane.b32.xlu0 %v1907_v41, %s2044_s21  ;;  %1913 = vrot.lane.b32.xlu1 %v1912_v49, %s2045_s22 }
 0x954   :  { %1918 = vrot.lane.b32.xlu1 %v1917_v30, %s2047_s24  ;;  %1903 = vrot.lane.b32.xlu0 %v1902_v57, %s2046_s23 }
 0x958   :  { %1923 = vrot.lane.b32.xlu1 %v1922_v47, %s2050_s6  ;;  %1249 = vrot.lane.b32.xlu0 %v2426_v36, %s2050_s6 }
 0x95c   :  { %1267 = vrot.lane.b32.xlu1 %v1190_v24, %s2051_s29  ;;  %1260 = vrot.lane.b32.xlu0 %v2038_v56, %s2049_s5 }
 0x960   :  { %1271 = vrot.lane.b32.xlu1 %v2438_v60, %s2051_s29  ;;  %1269 = vrot.lane.b32.xlu0 %v1191_v15, %s2051_s29 }
 0x964   :  { %1928 = vrot.lane.b32.xlu0 %v1927_v61, %s2043_s2 }
 0x9be   :  { %v1909_v36 = vpop.permute.xlu1 %1908  ;;  %v1894_v11 = vpop.permute.xlu0 %1893 }
 0x9bf   :  { %v1896_v50 = vunpack.i.h.bf16 %v1894_v11  ;;  %v1895_v23 = vunpack.i.l.bf16 %v1894_v11  ;;  %v1911_v55 = vunpack.i.h.bf16 %v1909_v36  ;;  %v1910_v5 = vunpack.i.l.bf16 %v1909_v36 }
 0x9c1   :  { %v1203_v2 = vsel %vm510_vm4, %v1895_v23, %v1896_v50  ;;  %v1202_v56 = vsel %vm510_vm4, %v1197_v51, %v1895_v23  ;;  %v1262_v62 = vsel %vm630_vm12, %v1910_v5, %v1911_v55 }
 0x9c2   :  { %v1937_v59 = vpack.i.bf16 %v1896_v50, %v1203_v2  ;;  %v1899_v63 = vpop.permute.xlu0 %1898  ;;  %v1914_v29 = vpop.permute.xlu1 %1913  ;;  %v1932_v60 = vpack.i.bf16 %v1202_v56, %v2450_v53 }
 0x9c3   :  { %v1901_v52 = vunpack.i.h.bf16 %v1899_v63  ;;  %v1900_v18 = vunpack.i.l.bf16 %v1899_v63  ;;  %v1916_v1 = vunpack.i.h.bf16 %v1914_v29  ;;  %v1915_v3 = vunpack.i.l.bf16 %v1914_v29 }
 0x9c4   :  { %1938 = vrot.lane.b32.xlu1 %v1937_v59, %s2043_s2  ;;  %1933 = vrot.lane.b32.xlu0 %v1932_v60, %s2043_s2 }
 0x9c5   :  { %v1230_v7 = vsel %vm486_vm7, %v1900_v18, %v1901_v52  ;;  %v1225_v19 = vsel %vm589_vm9, %v1915_v3, %v1916_v1  ;;  %v1224_v27 = vsel %vm589_vm9, %v1219_v58, %v1915_v3 }
 0x9c6   :  { %v1942_v8 = vpack.i.bf16 %v1901_v52, %v1230_v7  ;;  %v1919_v13 = vpop.permute.xlu1 %1918  ;;  %v1904_v14 = vpop.permute.xlu0 %1903  ;;  %v1957_v32 = vpack.i.bf16 %v1916_v1, %v1225_v19 }
 0x9c7   :  { %v1906_v20 = vunpack.i.h.bf16 %v1904_v14  ;;  %v1905_v26 = vunpack.i.l.bf16 %v1904_v14  ;;  %v1921_v33 = vunpack.i.h.bf16 %v1919_v13  ;;  %v1920_v38 = vunpack.i.l.bf16 %v1919_v13 }
 0x9c8   :  { %1943 = vrot.lane.b32.xlu0 %v1942_v8, %s2043_s2 }
 0x9c9   :  { %v1213_v53 = vsel %vm577_vm10, %v1208_v40, %v1905_v26  ;;  %v1214_v45 = vsel %vm577_vm10, %v1905_v26, %v1906_v20  ;;  %v1962_v17 = vpack.i.bf16 %v1920_v38, %v1900_v18  ;;  %v1240_v12 = vsel %vm606_vm11, %v1920_v38, %v1921_v33 }
 0x9ca   :  { %v1250_v39 = vpop.permute.xlu0 %1249  ;;  %v1947_v44 = vpack.i.bf16 %v1224_v27, %v1213_v53  ;;  %v1924_v48 = vpop.permute.xlu1 %1923  ;;  %v1952_v6 = vpack.i.bf16 %v1906_v20, %v1214_v45  ;;  %v1241_v35 = vsel %vm606_vm11, %v1921_v33, %v1239_v0 }
 0x9cb   :  { %v1926_v22 = vunpack.i.h.bf16 %v1924_v48  ;;  %v1925_v28 = vunpack.i.l.bf16 %v1924_v48  ;;  %v1972_v42 = vpack.i.bf16 %v1241_v35, %v1240_v12 }
 0x9cc   :  { %1948 = vrot.lane.b32.xlu1 %v1947_v44, %s2043_s2  ;;  %1958 = vrot.lane.b32.xlu0 %v1957_v32, %s2043_s2 }
 0x9cd   :  { %v1251_v46 = vsel %vm618_vm13, %v1925_v28, %v1926_v22  ;;  %v1252_v41 = vsel %vm618_vm13, %v1926_v22, %v1250_v39  ;;  %v1982_v49 = vpack.i.bf16 %v1910_v5, %v1925_v28 }
 0x9ce   :  { %v1261_v10 = vpop.permute.xlu0 %1260  ;;  %v1977_v43 = vpack.i.bf16 %v1252_v41, %v1251_v46  ;;  %v1268_v16 = vpop.permute.xlu1 %1267 }
 0x9cf   :  { %v1263_v34 = vsel %vm630_vm12, %v1911_v55, %v1261_v10 }
 0x9d0   :  { %1953 = vrot.lane.b32.xlu1 %v1952_v6, %s2043_s2  ;;  %1963 = vrot.lane.b32.xlu0 %v1962_v17, %s2043_s2  ;;  %v1967_v9 = vpack.i.bf16 %v1263_v34, %v1262_v62 }
 0x9d2   :  { %v1270_v4 = vpop.permute.xlu0 %1269  ;;  %v1272_v37 = vpop.permute.xlu1 %1271 }
 0x9d3   :  { %v1273_v21 = vsel %vm642_vm14, %v1268_v16, %v1270_v4  ;;  %v1274_v30 = vsel %vm642_vm14, %v1270_v4, %v1272_v37 }
 0x9d4   :  { %1973 = vrot.lane.b32.xlu1 %v1972_v42, %s2043_s2  ;;  %1968 = vrot.lane.b32.xlu0 %v1967_v9, %s2043_s2 }
 0x9d6   :  { %v1929_v57 = vpop.permute.xlu0 %1928 }
 0x9d7   :  { %v1931_v47 = vunpack.i.h.bf16 %v1929_v57  ;;  %v1930_v54 = vunpack.i.l.bf16 %v1929_v57 }
 0x9d8   :  { %1978 = vrot.lane.b32.xlu1 %v1977_v43, %s2043_s2  ;;  %1328 = vrot.lane.b32.xlu0 %v1273_v21, %s2043_s2 }
 0x9d9   :  { %v1333_v11 = vsel %vm549_vm8, %v1930_v54, %v1931_v47 }
 0x9dc   :  { %1983 = vrot.lane.b32.xlu1 %v1982_v49, %s2043_s2  ;;  %1326 = vrot.lane.b32.xlu0 %v1268_v16, %s2043_s2 }
 0x9e0   :  { %1330 = vrot.lane.b32.xlu1 %v1274_v30, %s2043_s2 }
 0xa36   :  { %v1939_v61 = vpop.permute.xlu1 %1938  ;;  %v1934_v24 = vpop.permute.xlu0 %1933 }
 0xa37   :  { %v1941_v15 = vunpack.i.h.bf16 %v1939_v61  ;;  %v1940_v40 = vunpack.i.l.bf16 %v1939_v61  ;;  %v1936_v51 = vunpack.i.h.bf16 %v1934_v24  ;;  %v1935_v0 = vunpack.i.l.bf16 %v1934_v24 }
 0xa39   :  { %v1334_v58 = vsel %vm549_vm8, %v1936_v51, %v1940_v40  ;;  %v1332_v36 = vsel %vm549_vm8, %v1935_v0, %v1930_v54  ;;  %v1335_v50 = vsel %vm549_vm8, %v1940_v40, %v1941_v15  ;;  %v2012_v51 = vld [vmem:[%s2659_s7] sm:$0xff] }
 0xa3a   :  { %v1766_v23 = vpack.c.bf16 %v1334_v58, %v1332_v36  ;;  %v1944_v2 = vpop.permute.xlu0 %1943  ;;  %v1764_v56 = vpack.c.bf16 %v1335_v50, %v1333_v11  ;;  %v2013_v58 = vld [vmem:[%s2659_s7 + $0x8] sm:$0xff] }
 0xa3b   :  { %v1946_v13 = vunpack.i.h.bf16 %v1944_v2  ;;  %v1945_v14 = vunpack.i.l.bf16 %v1944_v2 }
 0xa3c   :  { %1765 = vmatprep.subr.bf16.mxu1 %v1764_v56 }
 0xa3d   :  { %1767 = vmatpush1.bf16.msra.mxu1 %v1766_v23  ;;  %v1341_v5 = vsel %vm549_vm8, %v1945_v14, %v1946_v13 }
 0xa3e   :  { %v1949_v59 = vpop.permute.xlu1 %1948  ;;  %v1959_v63 = vpop.permute.xlu0 %1958 }
 0xa3f   :  { %v1951_v29 = vunpack.i.h.bf16 %v1949_v59  ;;  %v1961_v60 = vunpack.i.h.bf16 %v1959_v63  ;;  %v1960_v52 = vunpack.i.l.bf16 %v1959_v63  ;;  %v1950_v3 = vunpack.i.l.bf16 %v1949_v59 }
 0xa41   :  { %v1338_v20 = vsel %vm549_vm8, %v1951_v29, %v1960_v52  ;;  %v1339_v27 = vsel %vm549_vm8, %v1960_v52, %v1961_v60 }
 0xa42   :  { %v1954_v18 = vpop.permute.xlu1 %1953  ;;  %v1964_v1 = vpop.permute.xlu0 %1963 }
 0xa43   :  { %v1956_v7 = vunpack.i.h.bf16 %v1954_v18  ;;  %v1955_v8 = vunpack.i.l.bf16 %v1954_v18  ;;  %v1965_v19 = vunpack.i.l.bf16 %v1964_v1  ;;  %v1966_v44 = vunpack.i.h.bf16 %v1964_v1 }
 0xa45   :  { %v1336_v26 = vsel %vm549_vm8, %v1950_v3, %v1955_v8  ;;  %v1337_v53 = vsel %vm549_vm8, %v1955_v8, %v1956_v7  ;;  %v1340_v55 = vsel %vm549_vm8, %v1965_v19, %v1945_v14 }
 0xa46   :  { %v1770_v32 = vpack.c.bf16 %v1338_v20, %v1336_v26  ;;  %v1974_v33 = vpop.permute.xlu1 %1973  ;;  %v1969_v38 = vpop.permute.xlu0 %1968  ;;  %v1768_v39 = vpack.c.bf16 %v1339_v27, %v1337_v53 }
 0xa47   :  { %v1976_v45 = vunpack.i.h.bf16 %v1974_v33  ;;  %v1975_v48 = vunpack.i.l.bf16 %v1974_v33  ;;  %v1971_v6 = vunpack.i.h.bf16 %v1969_v38  ;;  %v1970_v10 = vunpack.i.l.bf16 %v1969_v38 }
 0xa48   :  { %1769 = vmatprep.subr.bf16.mxu1 %v1768_v39 }
 0xa49   :  { %v1342_v17 = vsel %vm549_vm8, %v1966_v44, %v1975_v48  ;;  %1771 = vmatpush1.bf16.msra.mxu1 %v1770_v32  ;;  %v1343_v12 = vsel %vm549_vm8, %v1975_v48, %v1976_v45  ;;  %v1347_v42 = vsel %vm549_vm8, %v1970_v10, %v1971_v6 }
 0xa4a   :  { %v1774_v22 = vpack.c.bf16 %v1342_v17, %v1340_v55  ;;  %v1979_v28 = vpop.permute.xlu1 %1978  ;;  %v1772_v34 = vpack.c.bf16 %v1343_v12, %v1341_v5  ;;  %v1329_v46 = vpop.permute.xlu0 %1328 }
 0xa4b   :  { %v1981_v35 = vunpack.i.h.bf16 %v1979_v28  ;;  %v1980_v62 = vunpack.i.l.bf16 %v1979_v28 }
 0xa4c   :  { %1773 = vmatprep.subr.bf16.mxu1 %v1772_v34 }
 0xa4d   :  { %1775 = vmatpush1.bf16.msra.mxu1 %v1774_v22  ;;  %v1345_v9 = vsel %vm549_vm8, %v1980_v62, %v1981_v35 }
 0xa4e   :  { %v1984_v41 = vpop.permute.xlu1 %1983  ;;  %v1776_v4 = vpack.c.bf16 %v1347_v42, %v1345_v9  ;;  %v1327_v47 = vpop.permute.xlu0 %1326 }
 0xa4f   :  { %v1986_v43 = vunpack.i.h.bf16 %v1984_v41  ;;  %v1985_v16 = vunpack.i.l.bf16 %v1984_v41  ;;  %v1348_v54 = vsel %vm549_vm8, %v1327_v47, %v1329_v46 }
 0xa50   :  { %1777 = vmatprep.subr.bf16.mxu1 %v1776_v4 }
 0xa51   :  { %v1344_v21 = vsel %vm549_vm8, %v1985_v16, %v1980_v62  ;;  %v1346_v49 = vsel %vm549_vm8, %v1986_v43, %v1970_v10 }
 0xa52   :  { %v1778_v37 = vpack.c.bf16 %v1346_v49, %v1344_v21  ;;  %v1331_v30 = vpop.permute.xlu1 %1330 }
 0xa53   :  { %v1349_v57 = vsel %vm549_vm8, %v1329_v46, %v1331_v30 }
 0xa54   :  { %1779 = vmatpush1.bf16.msra.mxu1 %v1778_v37 }
 0xa55   :  { %1384 = vmatprep.subr.mxu1 %v1349_v57 }
 0xa58   :  { %1385 = vmatpush1.msra.mxu1 %v1348_v54 }
 0xa59   :  { %1463 = vmatmul.mubr.msk.f32.vlgmr.msra.gmra.mrb[8].mxu1 %vm738_vm15, %v2515_v25 }
 0xb2c   :  { %v1434_v61 = vpop.f32.mrb[8].mxu1 }
 0xb2d   :  { %v1435_v24 = vadd.f32 %v1434_v61, %v2524_v31  ;;  %v1436_v15 = vpop.f32.mrb[9].mxu1 }
 0xb2e   :  { %v1437_v40 = vadd.f32 %v1436_v15, %v2524_v31 }
 0xb2f   :  { %v1439_v0 = vadd.f32 %v2012_v51, %v1435_v24 }
 0xb30   :  { %v1440_v36 = vadd.f32 %v2013_v58, %v1437_v40 }
 0xb31   :  { %1441 = vst [vmem:[#allocation3] sm:$0xff] %v1439_v0 }
 0xb32   :  { %1442 = vst [vmem:[#allocation3 + $0x8] sm:$0xff] %v1440_v36 }
 0xb33   :  { %2025 = shalt.err (!%p2022_p4)
}
 0xb34   :  { %s2026_s17 = scalar_lea.hbm %s2660_s8, 256 }
 0xb35   :  { %p2027_p5 = scmp.ne.s32.totalorder %s2660_s8, %s2026_s17  ;;  %p2030_p6 = scmp.lt.u32.totalorder %s2026_s17, %s2660_s8 }
 0xb37   :  { %p2032_p7 = pnand %p2030_p6, %p2027_p5 }
 0xb39   :  { %2035 = shalt.err (!%p2032_p7)
}
 0xb3a   :  { %1452 = dma.vmem_to_hbm [thread:$0]  %s1450_s0, 256, %s2660_s8, [#allocation4]  }
 0xb3b   :  { %2036 = dma.done.wait [#allocation4], 256  }
 0xb3c   :  { %2037 = vsyncadd [#allocation4], 4294967040 }
 0xb3d   :  { %1456 = vsyncpa [#allocation4], 1 }

</bundles_post_ra>
